<compile_context>
chip_gen: v5e
topology: v5e:2x2
jax: 0.10.0
libtpu: 0.0.40
codegen_flags: <defaults>
</compile_context>

<pallas_src>
import math

import numpy as np
import jax
import jax.numpy as jnp
from jax.experimental import pallas as pl
from jax.experimental.pallas import tpu as pltpu

_INV_SQRT2 = 1.0 / math.sqrt(2.0)
_GN_EPS = 1e-5


def _gelu(x):
    # exact GELU (PyTorch nn.GELU / F.gelu default)
    return 0.5 * x * (1.0 + jax.lax.erf(x * _INV_SQRT2))


def _silu(x):
    return x * jax.nn.sigmoid(x)


# ----------------------------------------------------------------------------
# Fused Down_mass forward. Accepts/returns PyTorch-style NCHW.
# ----------------------------------------------------------------------------
def down_mass_forward(x_nchw, t, v1, v2, v3, v4, p):
    B, Cin, H, W = x_nchw.shape
    assert H % 2 == 0 and W % 2 == 0
    Hh, Wh = H // 2, W // 2
    HW = Hh * Wh
    N = B * HW                                    # lane dim of every work tile
    Cout = p["w2a"].shape[-1]
    Cmax = max(Cin, Cout)
    E = t.shape[-1]
    dtype = x_nchw.dtype

    # ---------------- host-side prep (tiny, one pass over x / params) --------
    # Pool quadrants, channel-major, batch folded into lanes: (4, Cin, B*HW).
    def quad(dy, dx):
        return x_nchw[:, :, dy::2, dx::2].reshape(B, Cin, HW)

    xq = jnp.stack([quad(0, 0), quad(0, 1), quad(1, 0), quad(1, 1)], axis=0)
    xq = jnp.transpose(xq, (0, 2, 1, 3)).reshape(4, Cin, N)

    # Per-tap validity masks in OUTPUT coordinates; they also kill the roll
    # wrap-around across row / sample boundaries.  Shape (9, N).
    idx = np.arange(N)
    row = (idx % HW) // Wh
    col = idx % Wh
    tap_masks = []
    for dy in (-1, 0, 1):
        for dx in (-1, 0, 1):
            m = np.ones(N, np.float32)
            if dy == -1:
                m = m * (row >= 1)
            elif dy == 1:
                m = m * (row <= Hh - 2)
            if dx == -1:
                m = m * (col >= 1)
            elif dx == 1:
                m = m * (col <= Wh - 2)
            tap_masks.append(m.astype(np.float32))
    masks = jnp.asarray(np.stack(tap_masks, axis=0))              # (9, N)

    # One-hot sample-segment matrix: segT[b, p] = [p // HW == b].  (B, N)
    segT = jnp.asarray(
        (idx[None, :] // HW == np.arange(B)[:, None]).astype(np.float32))

    # Conv weights -> channel-major, tap-major columns: (Cout, 9*Cin).
    def convw(w):                                  # (3,3,ci,co) -> (co, 9*ci)
        ci, co = w.shape[2], w.shape[3]
        return jnp.transpose(w, (3, 0, 1, 2)).reshape(co, 9 * ci)

    w1a, w1b = convw(p["w1a"]), convw(p["w1b"])
    w2a, w2b = convw(p["w2a"]), convw(p["w2b"])

    # GN gammas/betas + pre-summed embedding bias packed into ONE (Cmax, 9) slab.
    def colpad(v):
        v = v.reshape(-1, 1)
        return jnp.pad(v, ((0, Cmax - v.shape[0]), (0, 0)))

    bemb = jnp.sum(p["lin_b"], axis=0)                            # (Cout,)
    gbp = jnp.concatenate(
        [colpad(p["g1a"]), colpad(p["b1a"]), colpad(p["g1b"]), colpad(p["b1b"]),
         colpad(p["g2a"]), colpad(p["b2a"]), colpad(p["g2b"]), colpad(p["b2b"]),
         colpad(bemb)], axis=1)                                   # (Cmax, 9)

    # 5x (SiLU -> Linear) block-stacked, lane-dense (Cout, 5E).
    vcat = jnp.concatenate([t, v1, v2, v3, v4], axis=1)            # (B, 5E)
    wembT = jnp.transpose(p["lin_w"], (2, 0, 1)).reshape(Cout, 5 * E)

    # ---------------- the fused kernel (single step, no grid) ----------------
    def kernel(xq_ref, msk_ref, seg_ref, w1a_ref, w1b_ref, w2a_ref, w2b_ref,
               gbp_ref, v_ref, we_ref, o_ref):
        segT_v = seg_ref[...]                                     # (B, N)
        msk = msk_ref[...]                                        # (9, N)
        gbp_v = gbp_ref[...]                                      # (Cmax, 9)

        def mm_tb(a, b):   # (M, K) x (R, K) -> (M, R)   (rhs transposed, MXU)
            return jax.lax.dot_general(
                a, b, (((1,), (1,)), ((), ())),
                preferred_element_type=jnp.float32)

        def lane_bcast(per_sample):   # (R, B) -> (R, N): repeat over segments
            return jnp.dot(per_sample, segT_v,
                           preferred_element_type=jnp.float32)

        # ---- MaxPool2d(2): max over the four stride-2 quadrants, (Cin, N) ---
        xp = jnp.maximum(jnp.maximum(xq_ref[0], xq_ref[1]),
                         jnp.maximum(xq_ref[2], xq_ref[3]))

        def conv3x3(inp, wmat, cin):
            """3x3 'same' conv, channel-major: 9 tap matmuls, inputs realigned
            with pltpu.roll (XLU) + boundary masks, accumulated in vregs."""
            acc = None
            k = 0
            for dy in (-1, 0, 1):
                for dx in (-1, 0, 1):
                    s = dy * Wh + dx
                    if s == 0:
                        piece = inp
                    else:
                        piece = pltpu.roll(inp, shift=(-s) % N, axis=1)
                        piece = piece * msk[k:k + 1, :]
                    wk = wmat[:, k * cin:(k + 1) * cin]            # (cout, cin)
                    contrib = jnp.dot(wk, piece,
                                      preferred_element_type=jnp.float32)
                    acc = contrib if acc is None else acc + contrib
                    k += 1
            return acc                                             # (cout, N)

        def gn(y, c, gcol, bcol):
            # GroupNorm(num_groups=1): per-sample stats over (c, HW), two-pass.
            inv_n = 1.0 / float(c * HW)
            mean_b = jnp.sum(mm_tb(y, segT_v), axis=0, keepdims=True) * inv_n
            d = y - lane_bcast(mean_b)                             # (c, N)
            var_b = jnp.sum(mm_tb(d * d, segT_v), axis=0, keepdims=True) * inv_n
            rstd = lane_bcast(jax.lax.rsqrt(var_b + _GN_EPS))      # (1, N)
            return d * rstd * gcol + bcol

        g1a, b1a = gbp_v[0:Cin, 0:1], gbp_v[0:Cin, 1:2]
        g1b, b1b = gbp_v[0:Cin, 2:3], gbp_v[0:Cin, 3:4]
        g2a, b2a = gbp_v[0:Cout, 4:5], gbp_v[0:Cout, 5:6]
        g2b, b2b = gbp_v[0:Cout, 6:7], gbp_v[0:Cout, 7:8]
        bembc = gbp_v[0:Cout, 8:9]

        # DoubleConv(cin, cin, residual=True): gelu(x + conv-gn-gelu-conv-gn(x))
        h = _gelu(gn(conv3x3(xp, w1a_ref[...], Cin), Cin, g1a, b1a))
        h = _gelu(xp + gn(conv3x3(h, w1b_ref[...], Cin), Cin, g1b, b1b))
        # DoubleConv(cin, cout): conv-gn-gelu-conv-gn
        h = _gelu(gn(conv3x3(h, w2a_ref[...], Cin), Cout, g2a, b2a))
        h = gn(conv3x3(h, w2b_ref[...], Cout), Cout, g2b, b2b)

        # 5x (SiLU -> Linear): one transposed matmul + pre-summed bias,
        # broadcast across each sample's lane segment.
        e_cb = mm_tb(we_ref[...], _silu(v_ref[...]))               # (Cout, B)
        e_lane = lane_bcast(e_cb + bembc)                          # (Cout, N)

        o_ref[...] = (h + e_lane).astype(o_ref.dtype)

    flops = int(2 * N * 9 * (2 * Cin * Cin + Cin * Cout + Cout * Cout)
                + 12 * N * (2 * Cin + 2 * Cout)
                + 2 * B * 5 * E * Cout + 2 * Cout * N)
    transcendentals = int(N * (2 * Cin + Cout) + B * 5 * E + 8 * B)
    bytes_accessed = int(4 * (xq.size + masks.size + segT.size
                              + w1a.size + w1b.size + w2a.size + w2b.size
                              + gbp.size + vcat.size + wembT.size + Cout * N))

    out2d = pl.pallas_call(
        kernel,
        out_shape=jax.ShapeDtypeStruct((Cout, N), dtype),
        cost_estimate=pl.CostEstimate(flops=flops,
                                      transcendentals=transcendentals,
                                      bytes_accessed=bytes_accessed),
    )(xq, masks, segT, w1a, w1b, w2a, w2b, gbp, vcat, wembT)

    # (Cout, B*HW) -> NCHW (B, Cout, Hh, Wh): tiny (few-KiB) layout fixup.
    return jnp.transpose(out2d.reshape(Cout, B, Hh, Wh), (1, 0, 2, 3))


# ----------------------------------------------------------------------------
# Pure-JAX reference (for verification).
# ----------------------------------------------------------------------------
def ref_forward(x_nchw, t, v1, v2, v3, v4, p):
    x = jnp.transpose(x_nchw, (0, 2, 3, 1))
    B, H, W, C = x.shape
    xp = jnp.max(x.reshape(B, H // 2, 2, W // 2, 2, C), axis=(2, 4))

    def conv(z, w):
        return jax.lax.conv_general_dilated(
            z, w, (1, 1), "SAME",
            dimension_numbers=("NHWC", "HWIO", "NHWC"),
            precision=jax.lax.Precision.HIGHEST)

    def gn(z, g, b):
        mu = jnp.mean(z, axis=(1, 2, 3), keepdims=True)
        var = jnp.mean((z - mu) ** 2, axis=(1, 2, 3), keepdims=True)
        return (z - mu) * jax.lax.rsqrt(var + _GN_EPS) * g + b

    h = _gelu(gn(conv(xp, p["w1a"]), p["g1a"], p["b1a"]))
    h = _gelu(xp + gn(conv(h, p["w1b"]), p["g1b"], p["b1b"]))
    h2 = _gelu(gn(conv(h, p["w2a"]), p["g2a"], p["b2a"]))
    h3 = gn(conv(h2, p["w2b"]), p["g2b"], p["b2b"])

    vecs = [t, v1, v2, v3, v4]
    e = jnp.zeros((x.shape[0], p["lin_w"].shape[-1]), jnp.float32)
    for i in range(5):
        e = e + jnp.dot(_silu(vecs[i]), p["lin_w"][i],
                        precision=jax.lax.Precision.HIGHEST) + p["lin_b"][i]

    out = h3 + e[:, None, None, :]
    return jnp.transpose(out, (0, 3, 1, 2))


# ----------------------------------------------------------------------------
# Deterministic parameter init (synthetic; shapes follow the PyTorch module).
# ----------------------------------------------------------------------------
def init_params(key, cin, cout, emb_dim):
    ks = jax.random.split(key, 20)

    def conv_w(k, ci, co):
        return (jax.random.normal(k, (3, 3, ci, co), jnp.float32)
                / np.sqrt(9.0 * ci)).astype(jnp.float32)

    def gn_params(k, c):
        k1, k2 = jax.random.split(k)
        g = 1.0 + 0.1 * jax.random.normal(k1, (c,), jnp.float32)
        b = 0.05 * jax.random.normal(k2, (c,), jnp.float32)
        return g, b

    p = {}
    p["w1a"] = conv_w(ks[0], cin, cin)
    p["g1a"], p["b1a"] = gn_params(ks[1], cin)
    p["w1b"] = conv_w(ks[2], cin, cin)
    p["g1b"], p["b1b"] = gn_params(ks[3], cin)
    p["w2a"] = conv_w(ks[4], cin, cout)
    p["g2a"], p["b2a"] = gn_params(ks[5], cout)
    p["w2b"] = conv_w(ks[6], cout, cout)
    p["g2b"], p["b2b"] = gn_params(ks[7], cout)
    # 5 Linear layers (emb_dim -> cout), stored as (E, Cout) i.e. W.T of PyTorch
    p["lin_w"] = 0.1 * jax.random.normal(ks[8], (5, emb_dim, cout), jnp.float32)
    p["lin_b"] = 0.05 * jax.random.normal(ks[9], (5, cout), jnp.float32)
    return p


if __name__ == "__main__":
    B, Cin, Cout, H, W, E = 2, 4, 8, 16, 16, 128

    key = jax.random.PRNGKey(0)
    k_x, k_t, k_v1, k_v2, k_v3, k_v4, k_p = jax.random.split(key, 7)

    x = jax.random.normal(k_x, (B, Cin, H, W), jnp.float32)   # NCHW like PyTorch
    t = jax.random.normal(k_t, (B, E), jnp.float32)
    v1 = jax.random.normal(k_v1, (B, E), jnp.float32)
    v2 = jax.random.normal(k_v2, (B, E), jnp.float32)
    v3 = jax.random.normal(k_v3, (B, E), jnp.float32)
    v4 = jax.random.normal(k_v4, (B, E), jnp.float32)

    params = init_params(k_p, Cin, Cout, E)

    fwd = jax.jit(down_mass_forward)
    out = jax.block_until_ready(fwd(x, t, v1, v2, v3, v4, params))
    assert out.shape == (B, Cout, H // 2, W // 2)

    ref = jax.block_until_ready(ref_forward(x, t, v1, v2, v3, v4, params))
    np.testing.assert_allclose(np.asarray(out), np.asarray(ref),
                               rtol=5e-3, atol=5e-3)

    print("KERNEL_OK")
</pallas_src>

<mosaic_0001>
module attributes {stable_mosaic.version = 11 : i64} {
  func.func @kernel(%arg0: memref<4x4x128xf32, #tpu.memory_space<vmem>>, %arg1: memref<9x128xf32, #tpu.memory_space<vmem>>, %arg2: memref<2x128xf32, #tpu.memory_space<vmem>>, %arg3: memref<4x36xf32, #tpu.memory_space<vmem>>, %arg4: memref<4x36xf32, #tpu.memory_space<vmem>>, %arg5: memref<8x36xf32, #tpu.memory_space<vmem>>, %arg6: memref<8x72xf32, #tpu.memory_space<vmem>>, %arg7: memref<8x9xf32, #tpu.memory_space<vmem>>, %arg8: memref<2x640xf32, #tpu.memory_space<vmem>>, %arg9: memref<8x640xf32, #tpu.memory_space<vmem>>, %arg10: memref<8x128xf32, #tpu.memory_space<vmem>>) attributes {dimension_semantics = [], scalar_prefetch = 0 : i64, scratch_operands = 0 : i64, tpu.core_type = #tpu.core_type<tc>} {
    %c0 = arith.constant 0 : index
    %c0_0 = arith.constant 0 : index
    %0 = vector.load %arg2[%c0, %c0_0] : memref<2x128xf32, #tpu.memory_space<vmem>>, vector<2x128xf32>
    %c0_1 = arith.constant 0 : index
    %c0_2 = arith.constant 0 : index
    %1 = vector.load %arg1[%c0_1, %c0_2] : memref<9x128xf32, #tpu.memory_space<vmem>>, vector<9x128xf32>
    %c0_3 = arith.constant 0 : index
    %c0_4 = arith.constant 0 : index
    %2 = vector.load %arg7[%c0_3, %c0_4] : memref<8x9xf32, #tpu.memory_space<vmem>>, vector<8x9xf32>
    %c0_5 = arith.constant 0 : index
    %c0_6 = arith.constant 0 : index
    %c0_7 = arith.constant 0 : index
    %3 = vector.load %arg0[%c0_5, %c0_6, %c0_7] : memref<4x4x128xf32, #tpu.memory_space<vmem>>, vector<1x4x128xf32>
    %4 = vector.shape_cast %3 : vector<1x4x128xf32> to vector<4x128xf32>
    %c1 = arith.constant 1 : index
    %c0_8 = arith.constant 0 : index
    %c0_9 = arith.constant 0 : index
    %5 = vector.load %arg0[%c1, %c0_8, %c0_9] : memref<4x4x128xf32, #tpu.memory_space<vmem>>, vector<1x4x128xf32>
    %6 = vector.shape_cast %5 : vector<1x4x128xf32> to vector<4x128xf32>
    %7 = arith.maximumf %4, %6 : vector<4x128xf32>
    %c2 = arith.constant 2 : index
    %c0_10 = arith.constant 0 : index
    %c0_11 = arith.constant 0 : index
    %8 = vector.load %arg0[%c2, %c0_10, %c0_11] : memref<4x4x128xf32, #tpu.memory_space<vmem>>, vector<1x4x128xf32>
    %9 = vector.shape_cast %8 : vector<1x4x128xf32> to vector<4x128xf32>
    %c3 = arith.constant 3 : index
    %c0_12 = arith.constant 0 : index
    %c0_13 = arith.constant 0 : index
    %10 = vector.load %arg0[%c3, %c0_12, %c0_13] : memref<4x4x128xf32, #tpu.memory_space<vmem>>, vector<1x4x128xf32>
    %11 = vector.shape_cast %10 : vector<1x4x128xf32> to vector<4x128xf32>
    %12 = arith.maximumf %9, %11 : vector<4x128xf32>
    %13 = arith.maximumf %7, %12 : vector<4x128xf32>
    %14 = vector.extract_strided_slice %2 {offsets = [0, 0], sizes = [4, 1], strides = [1, 1]} : vector<8x9xf32> to vector<4x1xf32>
    %15 = vector.extract_strided_slice %2 {offsets = [0, 1], sizes = [4, 1], strides = [1, 1]} : vector<8x9xf32> to vector<4x1xf32>
    %16 = vector.extract_strided_slice %2 {offsets = [0, 2], sizes = [4, 1], strides = [1, 1]} : vector<8x9xf32> to vector<4x1xf32>
    %17 = vector.extract_strided_slice %2 {offsets = [0, 3], sizes = [4, 1], strides = [1, 1]} : vector<8x9xf32> to vector<4x1xf32>
    %18 = vector.extract_strided_slice %2 {offsets = [0, 4], sizes = [8, 1], strides = [1, 1]} : vector<8x9xf32> to vector<8x1xf32>
    %19 = vector.extract_strided_slice %2 {offsets = [0, 5], sizes = [8, 1], strides = [1, 1]} : vector<8x9xf32> to vector<8x1xf32>
    %20 = vector.extract_strided_slice %2 {offsets = [0, 6], sizes = [8, 1], strides = [1, 1]} : vector<8x9xf32> to vector<8x1xf32>
    %21 = vector.extract_strided_slice %2 {offsets = [0, 7], sizes = [8, 1], strides = [1, 1]} : vector<8x9xf32> to vector<8x1xf32>
    %22 = vector.extract_strided_slice %2 {offsets = [0, 8], sizes = [8, 1], strides = [1, 1]} : vector<8x9xf32> to vector<8x1xf32>
    %c0_14 = arith.constant 0 : index
    %c0_15 = arith.constant 0 : index
    %23 = vector.load %arg3[%c0_14, %c0_15] : memref<4x36xf32, #tpu.memory_space<vmem>>, vector<4x36xf32>
    %c9_i32 = arith.constant 9 : i32
    %24 = tpu.dynamic_rotate %13 by %c9_i32 dim 1 : vector<4x128xf32>, i32 -> vector<4x128xf32>
    %25 = vector.extract_strided_slice %1 {offsets = [0, 0], sizes = [1, 128], strides = [1, 1]} : vector<9x128xf32> to vector<1x128xf32>
    %26 = vector.broadcast %25 : vector<1x128xf32> to vector<4x128xf32>
    %27 = arith.mulf %24, %26 : vector<4x128xf32>
    %28 = vector.extract_strided_slice %23 {offsets = [0, 0], sizes = [4, 4], strides = [1, 1]} : vector<4x36xf32> to vector<4x4xf32>
    %cst = arith.constant dense<0.000000e+00> : vector<4x128xf32>
    %29 = tpu.matmul %28, %27, %cst {dimension_numbers = #tpu.dot_dimension_numbers<[1], [0], [0], [1], [0, 0, 1, 1], [], []>} : vector<4x4xf32>, vector<4x128xf32>, vector<4x128xf32> -> vector<4x128xf32>
    %c8_i32 = arith.constant 8 : i32
    %30 = tpu.dynamic_rotate %13 by %c8_i32 dim 1 : vector<4x128xf32>, i32 -> vector<4x128xf32>
    %31 = vector.extract_strided_slice %1 {offsets = [1, 0], sizes = [1, 128], strides = [1, 1]} : vector<9x128xf32> to vector<1x128xf32>
    %32 = vector.broadcast %31 : vector<1x128xf32> to vector<4x128xf32>
    %33 = arith.mulf %30, %32 : vector<4x128xf32>
    %34 = vector.extract_strided_slice %23 {offsets = [0, 4], sizes = [4, 4], strides = [1, 1]} : vector<4x36xf32> to vector<4x4xf32>
    %cst_16 = arith.constant dense<0.000000e+00> : vector<4x128xf32>
    %35 = tpu.matmul %34, %33, %cst_16 {dimension_numbers = #tpu.dot_dimension_numbers<[1], [0], [0], [1], [0, 0, 1, 1], [], []>} : vector<4x4xf32>, vector<4x128xf32>, vector<4x128xf32> -> vector<4x128xf32>
    %36 = arith.addf %29, %35 : vector<4x128xf32>
    %c7_i32 = arith.constant 7 : i32
    %37 = tpu.dynamic_rotate %13 by %c7_i32 dim 1 : vector<4x128xf32>, i32 -> vector<4x128xf32>
    %38 = vector.extract_strided_slice %1 {offsets = [2, 0], sizes = [1, 128], strides = [1, 1]} : vector<9x128xf32> to vector<1x128xf32>
    %39 = vector.broadcast %38 : vector<1x128xf32> to vector<4x128xf32>
    %40 = arith.mulf %37, %39 : vector<4x128xf32>
    %41 = vector.extract_strided_slice %23 {offsets = [0, 8], sizes = [4, 4], strides = [1, 1]} : vector<4x36xf32> to vector<4x4xf32>
    %cst_17 = arith.constant dense<0.000000e+00> : vector<4x128xf32>
    %42 = tpu.matmul %41, %40, %cst_17 {dimension_numbers = #tpu.dot_dimension_numbers<[1], [0], [0], [1], [0, 0, 1, 1], [], []>} : vector<4x4xf32>, vector<4x128xf32>, vector<4x128xf32> -> vector<4x128xf32>
    %43 = arith.addf %36, %42 : vector<4x128xf32>
    %c1_i32 = arith.constant 1 : i32
    %44 = tpu.dynamic_rotate %13 by %c1_i32 dim 1 : vector<4x128xf32>, i32 -> vector<4x128xf32>
    %45 = vector.extract_strided_slice %1 {offsets = [3, 0], sizes = [1, 128], strides = [1, 1]} : vector<9x128xf32> to vector<1x128xf32>
    %46 = vector.broadcast %45 : vector<1x128xf32> to vector<4x128xf32>
    %47 = arith.mulf %44, %46 : vector<4x128xf32>
    %48 = vector.extract_strided_slice %23 {offsets = [0, 12], sizes = [4, 4], strides = [1, 1]} : vector<4x36xf32> to vector<4x4xf32>
    %cst_18 = arith.constant dense<0.000000e+00> : vector<4x128xf32>
    %49 = tpu.matmul %48, %47, %cst_18 {dimension_numbers = #tpu.dot_dimension_numbers<[1], [0], [0], [1], [0, 0, 1, 1], [], []>} : vector<4x4xf32>, vector<4x128xf32>, vector<4x128xf32> -> vector<4x128xf32>
    %50 = arith.addf %43, %49 : vector<4x128xf32>
    %51 = vector.extract_strided_slice %23 {offsets = [0, 16], sizes = [4, 4], strides = [1, 1]} : vector<4x36xf32> to vector<4x4xf32>
    %cst_19 = arith.constant dense<0.000000e+00> : vector<4x128xf32>
    %52 = tpu.matmul %51, %13, %cst_19 {dimension_numbers = #tpu.dot_dimension_numbers<[1], [0], [0], [1], [0, 0, 1, 1], [], []>} : vector<4x4xf32>, vector<4x128xf32>, vector<4x128xf32> -> vector<4x128xf32>
    %53 = arith.addf %50, %52 : vector<4x128xf32>
    %c127_i32 = arith.constant 127 : i32
    %54 = tpu.dynamic_rotate %13 by %c127_i32 dim 1 : vector<4x128xf32>, i32 -> vector<4x128xf32>
    %55 = vector.extract_strided_slice %1 {offsets = [5, 0], sizes = [1, 128], strides = [1, 1]} : vector<9x128xf32> to vector<1x128xf32>
    %56 = vector.broadcast %55 : vector<1x128xf32> to vector<4x128xf32>
    %57 = arith.mulf %54, %56 : vector<4x128xf32>
    %58 = vector.extract_strided_slice %23 {offsets = [0, 20], sizes = [4, 4], strides = [1, 1]} : vector<4x36xf32> to vector<4x4xf32>
    %cst_20 = arith.constant dense<0.000000e+00> : vector<4x128xf32>
    %59 = tpu.matmul %58, %57, %cst_20 {dimension_numbers = #tpu.dot_dimension_numbers<[1], [0], [0], [1], [0, 0, 1, 1], [], []>} : vector<4x4xf32>, vector<4x128xf32>, vector<4x128xf32> -> vector<4x128xf32>
    %60 = arith.addf %53, %59 : vector<4x128xf32>
    %c121_i32 = arith.constant 121 : i32
    %61 = tpu.dynamic_rotate %13 by %c121_i32 dim 1 : vector<4x128xf32>, i32 -> vector<4x128xf32>
    %62 = vector.extract_strided_slice %1 {offsets = [6, 0], sizes = [1, 128], strides = [1, 1]} : vector<9x128xf32> to vector<1x128xf32>
    %63 = vector.broadcast %62 : vector<1x128xf32> to vector<4x128xf32>
    %64 = arith.mulf %61, %63 : vector<4x128xf32>
    %65 = vector.extract_strided_slice %23 {offsets = [0, 24], sizes = [4, 4], strides = [1, 1]} : vector<4x36xf32> to vector<4x4xf32>
    %cst_21 = arith.constant dense<0.000000e+00> : vector<4x128xf32>
    %66 = tpu.matmul %65, %64, %cst_21 {dimension_numbers = #tpu.dot_dimension_numbers<[1], [0], [0], [1], [0, 0, 1, 1], [], []>} : vector<4x4xf32>, vector<4x128xf32>, vector<4x128xf32> -> vector<4x128xf32>
    %67 = arith.addf %60, %66 : vector<4x128xf32>
    %c120_i32 = arith.constant 120 : i32
    %68 = tpu.dynamic_rotate %13 by %c120_i32 dim 1 : vector<4x128xf32>, i32 -> vector<4x128xf32>
    %69 = vector.extract_strided_slice %1 {offsets = [7, 0], sizes = [1, 128], strides = [1, 1]} : vector<9x128xf32> to vector<1x128xf32>
    %70 = vector.broadcast %69 : vector<1x128xf32> to vector<4x128xf32>
    %71 = arith.mulf %68, %70 : vector<4x128xf32>
    %72 = vector.extract_strided_slice %23 {offsets = [0, 28], sizes = [4, 4], strides = [1, 1]} : vector<4x36xf32> to vector<4x4xf32>
    %cst_22 = arith.constant dense<0.000000e+00> : vector<4x128xf32>
    %73 = tpu.matmul %72, %71, %cst_22 {dimension_numbers = #tpu.dot_dimension_numbers<[1], [0], [0], [1], [0, 0, 1, 1], [], []>} : vector<4x4xf32>, vector<4x128xf32>, vector<4x128xf32> -> vector<4x128xf32>
    %74 = arith.addf %67, %73 : vector<4x128xf32>
    %c119_i32 = arith.constant 119 : i32
    %75 = tpu.dynamic_rotate %13 by %c119_i32 dim 1 : vector<4x128xf32>, i32 -> vector<4x128xf32>
    %76 = vector.extract_strided_slice %1 {offsets = [8, 0], sizes = [1, 128], strides = [1, 1]} : vector<9x128xf32> to vector<1x128xf32>
    %77 = vector.broadcast %76 : vector<1x128xf32> to vector<4x128xf32>
    %78 = arith.mulf %75, %77 : vector<4x128xf32>
    %79 = vector.extract_strided_slice %23 {offsets = [0, 32], sizes = [4, 4], strides = [1, 1]} : vector<4x36xf32> to vector<4x4xf32>
    %cst_23 = arith.constant dense<0.000000e+00> : vector<4x128xf32>
    %80 = tpu.matmul %79, %78, %cst_23 {dimension_numbers = #tpu.dot_dimension_numbers<[1], [0], [0], [1], [0, 0, 1, 1], [], []>} : vector<4x4xf32>, vector<4x128xf32>, vector<4x128xf32> -> vector<4x128xf32>
    %81 = arith.addf %74, %80 : vector<4x128xf32>
    %cst_24 = arith.constant dense<0.000000e+00> : vector<4x2xf32>
    %82 = tpu.matmul %81, %0, %cst_24 {dimension_numbers = #tpu.dot_dimension_numbers<[1], [1], [0], [0], [0, 0, 1, 0], [], []>} : vector<4x128xf32>, vector<2x128xf32>, vector<4x2xf32> -> vector<4x2xf32>
    %cst_25 = arith.constant dense<0.000000e+00> : vector<2xf32>
    %83 = vector.multi_reduction <add>, %82, %cst_25 [0] : vector<4x2xf32> to vector<2xf32>
    %84 = vector.shape_cast %83 : vector<2xf32> to vector<1x2xf32>
    %cst_26 = arith.constant 3.906250e-03 : f32
    %85 = vector.broadcast %cst_26 : f32 to vector<1x2xf32>
    %86 = arith.mulf %84, %85 : vector<1x2xf32>
    %cst_27 = arith.constant dense<0.000000e+00> : vector<1x128xf32>
    %87 = tpu.matmul %86, %0, %cst_27 {dimension_numbers = #tpu.dot_dimension_numbers<[1], [0], [0], [1], [0, 0, 1, 1], [], []>} : vector<1x2xf32>, vector<2x128xf32>, vector<1x128xf32> -> vector<1x128xf32>
    %88 = vector.broadcast %87 : vector<1x128xf32> to vector<4x128xf32>
    %89 = arith.subf %81, %88 : vector<4x128xf32>
    %90 = arith.mulf %89, %89 : vector<4x128xf32>
    %cst_28 = arith.constant dense<0.000000e+00> : vector<4x2xf32>
    %91 = tpu.matmul %90, %0, %cst_28 {dimension_numbers = #tpu.dot_dimension_numbers<[1], [1], [0], [0], [0, 0, 1, 0], [], []>} : vector<4x128xf32>, vector<2x128xf32>, vector<4x2xf32> -> vector<4x2xf32>
    %cst_29 = arith.constant dense<0.000000e+00> : vector<2xf32>
    %92 = vector.multi_reduction <add>, %91, %cst_29 [0] : vector<4x2xf32> to vector<2xf32>
    %93 = vector.shape_cast %92 : vector<2xf32> to vector<1x2xf32>
    %cst_30 = arith.constant 3.906250e-03 : f32
    %94 = vector.broadcast %cst_30 : f32 to vector<1x2xf32>
    %95 = arith.mulf %93, %94 : vector<1x2xf32>
    %cst_31 = arith.constant 9.99999974E-6 : f32
    %96 = vector.broadcast %cst_31 : f32 to vector<1x2xf32>
    %97 = arith.addf %95, %96 : vector<1x2xf32>
    %98 = math.rsqrt %97 : vector<1x2xf32>
    %cst_32 = arith.constant dense<0.000000e+00> : vector<1x128xf32>
    %99 = tpu.matmul %98, %0, %cst_32 {dimension_numbers = #tpu.dot_dimension_numbers<[1], [0], [0], [1], [0, 0, 1, 1], [], []>} : vector<1x2xf32>, vector<2x128xf32>, vector<1x128xf32> -> vector<1x128xf32>
    %100 = vector.broadcast %99 : vector<1x128xf32> to vector<4x128xf32>
    %101 = arith.mulf %89, %100 : vector<4x128xf32>
    %102 = vector.broadcast %14 : vector<4x1xf32> to vector<4x128xf32>
    %103 = arith.mulf %101, %102 : vector<4x128xf32>
    %104 = vector.broadcast %15 : vector<4x1xf32> to vector<4x128xf32>
    %105 = arith.addf %103, %104 : vector<4x128xf32>
    %cst_33 = arith.constant 5.000000e-01 : f32
    %106 = vector.broadcast %cst_33 : f32 to vector<4x128xf32>
    %107 = arith.mulf %106, %105 : vector<4x128xf32>
    %cst_34 = arith.constant 0.707106769 : f32
    %108 = vector.broadcast %cst_34 : f32 to vector<4x128xf32>
    %109 = arith.mulf %105, %108 : vector<4x128xf32>
    %110 = math.erf %109 : vector<4x128xf32>
    %cst_35 = arith.constant 1.000000e+00 : f32
    %111 = vector.broadcast %cst_35 : f32 to vector<4x128xf32>
    %112 = arith.addf %111, %110 : vector<4x128xf32>
    %113 = arith.mulf %107, %112 : vector<4x128xf32>
    %c0_36 = arith.constant 0 : index
    %c0_37 = arith.constant 0 : index
    %114 = vector.load %arg4[%c0_36, %c0_37] : memref<4x36xf32, #tpu.memory_space<vmem>>, vector<4x36xf32>
    %c9_i32_38 = arith.constant 9 : i32
    %115 = tpu.dynamic_rotate %113 by %c9_i32_38 dim 1 : vector<4x128xf32>, i32 -> vector<4x128xf32>
    %116 = vector.extract_strided_slice %1 {offsets = [0, 0], sizes = [1, 128], strides = [1, 1]} : vector<9x128xf32> to vector<1x128xf32>
    %117 = vector.broadcast %116 : vector<1x128xf32> to vector<4x128xf32>
    %118 = arith.mulf %115, %117 : vector<4x128xf32>
    %119 = vector.extract_strided_slice %114 {offsets = [0, 0], sizes = [4, 4], strides = [1, 1]} : vector<4x36xf32> to vector<4x4xf32>
    %cst_39 = arith.constant dense<0.000000e+00> : vector<4x128xf32>
    %120 = tpu.matmul %119, %118, %cst_39 {dimension_numbers = #tpu.dot_dimension_numbers<[1], [0], [0], [1], [0, 0, 1, 1], [], []>} : vector<4x4xf32>, vector<4x128xf32>, vector<4x128xf32> -> vector<4x128xf32>
    %c8_i32_40 = arith.constant 8 : i32
    %121 = tpu.dynamic_rotate %113 by %c8_i32_40 dim 1 : vector<4x128xf32>, i32 -> vector<4x128xf32>
    %122 = vector.extract_strided_slice %1 {offsets = [1, 0], sizes = [1, 128], strides = [1, 1]} : vector<9x128xf32> to vector<1x128xf32>
    %123 = vector.broadcast %122 : vector<1x128xf32> to vector<4x128xf32>
    %124 = arith.mulf %121, %123 : vector<4x128xf32>
    %125 = vector.extract_strided_slice %114 {offsets = [0, 4], sizes = [4, 4], strides = [1, 1]} : vector<4x36xf32> to vector<4x4xf32>
    %cst_41 = arith.constant dense<0.000000e+00> : vector<4x128xf32>
    %126 = tpu.matmul %125, %124, %cst_41 {dimension_numbers = #tpu.dot_dimension_numbers<[1], [0], [0], [1], [0, 0, 1, 1], [], []>} : vector<4x4xf32>, vector<4x128xf32>, vector<4x128xf32> -> vector<4x128xf32>
    %127 = arith.addf %120, %126 : vector<4x128xf32>
    %c7_i32_42 = arith.constant 7 : i32
    %128 = tpu.dynamic_rotate %113 by %c7_i32_42 dim 1 : vector<4x128xf32>, i32 -> vector<4x128xf32>
    %129 = vector.extract_strided_slice %1 {offsets = [2, 0], sizes = [1, 128], strides = [1, 1]} : vector<9x128xf32> to vector<1x128xf32>
    %130 = vector.broadcast %129 : vector<1x128xf32> to vector<4x128xf32>
    %131 = arith.mulf %128, %130 : vector<4x128xf32>
    %132 = vector.extract_strided_slice %114 {offsets = [0, 8], sizes = [4, 4], strides = [1, 1]} : vector<4x36xf32> to vector<4x4xf32>
    %cst_43 = arith.constant dense<0.000000e+00> : vector<4x128xf32>
    %133 = tpu.matmul %132, %131, %cst_43 {dimension_numbers = #tpu.dot_dimension_numbers<[1], [0], [0], [1], [0, 0, 1, 1], [], []>} : vector<4x4xf32>, vector<4x128xf32>, vector<4x128xf32> -> vector<4x128xf32>
    %134 = arith.addf %127, %133 : vector<4x128xf32>
    %c1_i32_44 = arith.constant 1 : i32
    %135 = tpu.dynamic_rotate %113 by %c1_i32_44 dim 1 : vector<4x128xf32>, i32 -> vector<4x128xf32>
    %136 = vector.extract_strided_slice %1 {offsets = [3, 0], sizes = [1, 128], strides = [1, 1]} : vector<9x128xf32> to vector<1x128xf32>
    %137 = vector.broadcast %136 : vector<1x128xf32> to vector<4x128xf32>
    %138 = arith.mulf %135, %137 : vector<4x128xf32>
    %139 = vector.extract_strided_slice %114 {offsets = [0, 12], sizes = [4, 4], strides = [1, 1]} : vector<4x36xf32> to vector<4x4xf32>
    %cst_45 = arith.constant dense<0.000000e+00> : vector<4x128xf32>
    %140 = tpu.matmul %139, %138, %cst_45 {dimension_numbers = #tpu.dot_dimension_numbers<[1], [0], [0], [1], [0, 0, 1, 1], [], []>} : vector<4x4xf32>, vector<4x128xf32>, vector<4x128xf32> -> vector<4x128xf32>
    %141 = arith.addf %134, %140 : vector<4x128xf32>
    %142 = vector.extract_strided_slice %114 {offsets = [0, 16], sizes = [4, 4], strides = [1, 1]} : vector<4x36xf32> to vector<4x4xf32>
    %cst_46 = arith.constant dense<0.000000e+00> : vector<4x128xf32>
    %143 = tpu.matmul %142, %113, %cst_46 {dimension_numbers = #tpu.dot_dimension_numbers<[1], [0], [0], [1], [0, 0, 1, 1], [], []>} : vector<4x4xf32>, vector<4x128xf32>, vector<4x128xf32> -> vector<4x128xf32>
    %144 = arith.addf %141, %143 : vector<4x128xf32>
    %c127_i32_47 = arith.constant 127 : i32
    %145 = tpu.dynamic_rotate %113 by %c127_i32_47 dim 1 : vector<4x128xf32>, i32 -> vector<4x128xf32>
    %146 = vector.extract_strided_slice %1 {offsets = [5, 0], sizes = [1, 128], strides = [1, 1]} : vector<9x128xf32> to vector<1x128xf32>
    %147 = vector.broadcast %146 : vector<1x128xf32> to vector<4x128xf32>
    %148 = arith.mulf %145, %147 : vector<4x128xf32>
    %149 = vector.extract_strided_slice %114 {offsets = [0, 20], sizes = [4, 4], strides = [1, 1]} : vector<4x36xf32> to vector<4x4xf32>
    %cst_48 = arith.constant dense<0.000000e+00> : vector<4x128xf32>
    %150 = tpu.matmul %149, %148, %cst_48 {dimension_numbers = #tpu.dot_dimension_numbers<[1], [0], [0], [1], [0, 0, 1, 1], [], []>} : vector<4x4xf32>, vector<4x128xf32>, vector<4x128xf32> -> vector<4x128xf32>
    %151 = arith.addf %144, %150 : vector<4x128xf32>
    %c121_i32_49 = arith.constant 121 : i32
    %152 = tpu.dynamic_rotate %113 by %c121_i32_49 dim 1 : vector<4x128xf32>, i32 -> vector<4x128xf32>
    %153 = vector.extract_strided_slice %1 {offsets = [6, 0], sizes = [1, 128], strides = [1, 1]} : vector<9x128xf32> to vector<1x128xf32>
    %154 = vector.broadcast %153 : vector<1x128xf32> to vector<4x128xf32>
    %155 = arith.mulf %152, %154 : vector<4x128xf32>
    %156 = vector.extract_strided_slice %114 {offsets = [0, 24], sizes = [4, 4], strides = [1, 1]} : vector<4x36xf32> to vector<4x4xf32>
    %cst_50 = arith.constant dense<0.000000e+00> : vector<4x128xf32>
    %157 = tpu.matmul %156, %155, %cst_50 {dimension_numbers = #tpu.dot_dimension_numbers<[1], [0], [0], [1], [0, 0, 1, 1], [], []>} : vector<4x4xf32>, vector<4x128xf32>, vector<4x128xf32> -> vector<4x128xf32>
    %158 = arith.addf %151, %157 : vector<4x128xf32>
    %c120_i32_51 = arith.constant 120 : i32
    %159 = tpu.dynamic_rotate %113 by %c120_i32_51 dim 1 : vector<4x128xf32>, i32 -> vector<4x128xf32>
    %160 = vector.extract_strided_slice %1 {offsets = [7, 0], sizes = [1, 128], strides = [1, 1]} : vector<9x128xf32> to vector<1x128xf32>
    %161 = vector.broadcast %160 : vector<1x128xf32> to vector<4x128xf32>
    %162 = arith.mulf %159, %161 : vector<4x128xf32>
    %163 = vector.extract_strided_slice %114 {offsets = [0, 28], sizes = [4, 4], strides = [1, 1]} : vector<4x36xf32> to vector<4x4xf32>
    %cst_52 = arith.constant dense<0.000000e+00> : vector<4x128xf32>
    %164 = tpu.matmul %163, %162, %cst_52 {dimension_numbers = #tpu.dot_dimension_numbers<[1], [0], [0], [1], [0, 0, 1, 1], [], []>} : vector<4x4xf32>, vector<4x128xf32>, vector<4x128xf32> -> vector<4x128xf32>
    %165 = arith.addf %158, %164 : vector<4x128xf32>
    %c119_i32_53 = arith.constant 119 : i32
    %166 = tpu.dynamic_rotate %113 by %c119_i32_53 dim 1 : vector<4x128xf32>, i32 -> vector<4x128xf32>
    %167 = vector.extract_strided_slice %1 {offsets = [8, 0], sizes = [1, 128], strides = [1, 1]} : vector<9x128xf32> to vector<1x128xf32>
    %168 = vector.broadcast %167 : vector<1x128xf32> to vector<4x128xf32>
    %169 = arith.mulf %166, %168 : vector<4x128xf32>
    %170 = vector.extract_strided_slice %114 {offsets = [0, 32], sizes = [4, 4], strides = [1, 1]} : vector<4x36xf32> to vector<4x4xf32>
    %cst_54 = arith.constant dense<0.000000e+00> : vector<4x128xf32>
    %171 = tpu.matmul %170, %169, %cst_54 {dimension_numbers = #tpu.dot_dimension_numbers<[1], [0], [0], [1], [0, 0, 1, 1], [], []>} : vector<4x4xf32>, vector<4x128xf32>, vector<4x128xf32> -> vector<4x128xf32>
    %172 = arith.addf %165, %171 : vector<4x128xf32>
    %cst_55 = arith.constant dense<0.000000e+00> : vector<4x2xf32>
    %173 = tpu.matmul %172, %0, %cst_55 {dimension_numbers = #tpu.dot_dimension_numbers<[1], [1], [0], [0], [0, 0, 1, 0], [], []>} : vector<4x128xf32>, vector<2x128xf32>, vector<4x2xf32> -> vector<4x2xf32>
    %cst_56 = arith.constant dense<0.000000e+00> : vector<2xf32>
    %174 = vector.multi_reduction <add>, %173, %cst_56 [0] : vector<4x2xf32> to vector<2xf32>
    %175 = vector.shape_cast %174 : vector<2xf32> to vector<1x2xf32>
    %cst_57 = arith.constant 3.906250e-03 : f32
    %176 = vector.broadcast %cst_57 : f32 to vector<1x2xf32>
    %177 = arith.mulf %175, %176 : vector<1x2xf32>
    %cst_58 = arith.constant dense<0.000000e+00> : vector<1x128xf32>
    %178 = tpu.matmul %177, %0, %cst_58 {dimension_numbers = #tpu.dot_dimension_numbers<[1], [0], [0], [1], [0, 0, 1, 1], [], []>} : vector<1x2xf32>, vector<2x128xf32>, vector<1x128xf32> -> vector<1x128xf32>
    %179 = vector.broadcast %178 : vector<1x128xf32> to vector<4x128xf32>
    %180 = arith.subf %172, %179 : vector<4x128xf32>
    %181 = arith.mulf %180, %180 : vector<4x128xf32>
    %cst_59 = arith.constant dense<0.000000e+00> : vector<4x2xf32>
    %182 = tpu.matmul %181, %0, %cst_59 {dimension_numbers = #tpu.dot_dimension_numbers<[1], [1], [0], [0], [0, 0, 1, 0], [], []>} : vector<4x128xf32>, vector<2x128xf32>, vector<4x2xf32> -> vector<4x2xf32>
    %cst_60 = arith.constant dense<0.000000e+00> : vector<2xf32>
    %183 = vector.multi_reduction <add>, %182, %cst_60 [0] : vector<4x2xf32> to vector<2xf32>
    %184 = vector.shape_cast %183 : vector<2xf32> to vector<1x2xf32>
    %cst_61 = arith.constant 3.906250e-03 : f32
    %185 = vector.broadcast %cst_61 : f32 to vector<1x2xf32>
    %186 = arith.mulf %184, %185 : vector<1x2xf32>
    %cst_62 = arith.constant 9.99999974E-6 : f32
    %187 = vector.broadcast %cst_62 : f32 to vector<1x2xf32>
    %188 = arith.addf %186, %187 : vector<1x2xf32>
    %189 = math.rsqrt %188 : vector<1x2xf32>
    %cst_63 = arith.constant dense<0.000000e+00> : vector<1x128xf32>
    %190 = tpu.matmul %189, %0, %cst_63 {dimension_numbers = #tpu.dot_dimension_numbers<[1], [0], [0], [1], [0, 0, 1, 1], [], []>} : vector<1x2xf32>, vector<2x128xf32>, vector<1x128xf32> -> vector<1x128xf32>
    %191 = vector.broadcast %190 : vector<1x128xf32> to vector<4x128xf32>
    %192 = arith.mulf %180, %191 : vector<4x128xf32>
    %193 = vector.broadcast %16 : vector<4x1xf32> to vector<4x128xf32>
    %194 = arith.mulf %192, %193 : vector<4x128xf32>
    %195 = vector.broadcast %17 : vector<4x1xf32> to vector<4x128xf32>
    %196 = arith.addf %194, %195 : vector<4x128xf32>
    %197 = arith.addf %13, %196 : vector<4x128xf32>
    %cst_64 = arith.constant 5.000000e-01 : f32
    %198 = vector.broadcast %cst_64 : f32 to vector<4x128xf32>
    %199 = arith.mulf %198, %197 : vector<4x128xf32>
    %cst_65 = arith.constant 0.707106769 : f32
    %200 = vector.broadcast %cst_65 : f32 to vector<4x128xf32>
    %201 = arith.mulf %197, %200 : vector<4x128xf32>
    %202 = math.erf %201 : vector<4x128xf32>
    %cst_66 = arith.constant 1.000000e+00 : f32
    %203 = vector.broadcast %cst_66 : f32 to vector<4x128xf32>
    %204 = arith.addf %203, %202 : vector<4x128xf32>
    %205 = arith.mulf %199, %204 : vector<4x128xf32>
    %c0_67 = arith.constant 0 : index
    %c0_68 = arith.constant 0 : index
    %206 = vector.load %arg5[%c0_67, %c0_68] : memref<8x36xf32, #tpu.memory_space<vmem>>, vector<8x36xf32>
    %c9_i32_69 = arith.constant 9 : i32
    %207 = tpu.dynamic_rotate %205 by %c9_i32_69 dim 1 : vector<4x128xf32>, i32 -> vector<4x128xf32>
    %208 = vector.extract_strided_slice %1 {offsets = [0, 0], sizes = [1, 128], strides = [1, 1]} : vector<9x128xf32> to vector<1x128xf32>
    %209 = vector.broadcast %208 : vector<1x128xf32> to vector<4x128xf32>
    %210 = arith.mulf %207, %209 : vector<4x128xf32>
    %211 = vector.extract_strided_slice %206 {offsets = [0, 0], sizes = [8, 4], strides = [1, 1]} : vector<8x36xf32> to vector<8x4xf32>
    %cst_70 = arith.constant dense<0.000000e+00> : vector<8x128xf32>
    %212 = tpu.matmul %211, %210, %cst_70 {dimension_numbers = #tpu.dot_dimension_numbers<[1], [0], [0], [1], [0, 0, 1, 1], [], []>} : vector<8x4xf32>, vector<4x128xf32>, vector<8x128xf32> -> vector<8x128xf32>
    %c8_i32_71 = arith.constant 8 : i32
    %213 = tpu.dynamic_rotate %205 by %c8_i32_71 dim 1 : vector<4x128xf32>, i32 -> vector<4x128xf32>
    %214 = vector.extract_strided_slice %1 {offsets = [1, 0], sizes = [1, 128], strides = [1, 1]} : vector<9x128xf32> to vector<1x128xf32>
    %215 = vector.broadcast %214 : vector<1x128xf32> to vector<4x128xf32>
    %216 = arith.mulf %213, %215 : vector<4x128xf32>
    %217 = vector.extract_strided_slice %206 {offsets = [0, 4], sizes = [8, 4], strides = [1, 1]} : vector<8x36xf32> to vector<8x4xf32>
    %cst_72 = arith.constant dense<0.000000e+00> : vector<8x128xf32>
    %218 = tpu.matmul %217, %216, %cst_72 {dimension_numbers = #tpu.dot_dimension_numbers<[1], [0], [0], [1], [0, 0, 1, 1], [], []>} : vector<8x4xf32>, vector<4x128xf32>, vector<8x128xf32> -> vector<8x128xf32>
    %219 = arith.addf %212, %218 : vector<8x128xf32>
    %c7_i32_73 = arith.constant 7 : i32
    %220 = tpu.dynamic_rotate %205 by %c7_i32_73 dim 1 : vector<4x128xf32>, i32 -> vector<4x128xf32>
    %221 = vector.extract_strided_slice %1 {offsets = [2, 0], sizes = [1, 128], strides = [1, 1]} : vector<9x128xf32> to vector<1x128xf32>
    %222 = vector.broadcast %221 : vector<1x128xf32> to vector<4x128xf32>
    %223 = arith.mulf %220, %222 : vector<4x128xf32>
    %224 = vector.extract_strided_slice %206 {offsets = [0, 8], sizes = [8, 4], strides = [1, 1]} : vector<8x36xf32> to vector<8x4xf32>
    %cst_74 = arith.constant dense<0.000000e+00> : vector<8x128xf32>
    %225 = tpu.matmul %224, %223, %cst_74 {dimension_numbers = #tpu.dot_dimension_numbers<[1], [0], [0], [1], [0, 0, 1, 1], [], []>} : vector<8x4xf32>, vector<4x128xf32>, vector<8x128xf32> -> vector<8x128xf32>
    %226 = arith.addf %219, %225 : vector<8x128xf32>
    %c1_i32_75 = arith.constant 1 : i32
    %227 = tpu.dynamic_rotate %205 by %c1_i32_75 dim 1 : vector<4x128xf32>, i32 -> vector<4x128xf32>
    %228 = vector.extract_strided_slice %1 {offsets = [3, 0], sizes = [1, 128], strides = [1, 1]} : vector<9x128xf32> to vector<1x128xf32>
    %229 = vector.broadcast %228 : vector<1x128xf32> to vector<4x128xf32>
    %230 = arith.mulf %227, %229 : vector<4x128xf32>
    %231 = vector.extract_strided_slice %206 {offsets = [0, 12], sizes = [8, 4], strides = [1, 1]} : vector<8x36xf32> to vector<8x4xf32>
    %cst_76 = arith.constant dense<0.000000e+00> : vector<8x128xf32>
    %232 = tpu.matmul %231, %230, %cst_76 {dimension_numbers = #tpu.dot_dimension_numbers<[1], [0], [0], [1], [0, 0, 1, 1], [], []>} : vector<8x4xf32>, vector<4x128xf32>, vector<8x128xf32> -> vector<8x128xf32>
    %233 = arith.addf %226, %232 : vector<8x128xf32>
    %234 = vector.extract_strided_slice %206 {offsets = [0, 16], sizes = [8, 4], strides = [1, 1]} : vector<8x36xf32> to vector<8x4xf32>
    %cst_77 = arith.constant dense<0.000000e+00> : vector<8x128xf32>
    %235 = tpu.matmul %234, %205, %cst_77 {dimension_numbers = #tpu.dot_dimension_numbers<[1], [0], [0], [1], [0, 0, 1, 1], [], []>} : vector<8x4xf32>, vector<4x128xf32>, vector<8x128xf32> -> vector<8x128xf32>
    %236 = arith.addf %233, %235 : vector<8x128xf32>
    %c127_i32_78 = arith.constant 127 : i32
    %237 = tpu.dynamic_rotate %205 by %c127_i32_78 dim 1 : vector<4x128xf32>, i32 -> vector<4x128xf32>
    %238 = vector.extract_strided_slice %1 {offsets = [5, 0], sizes = [1, 128], strides = [1, 1]} : vector<9x128xf32> to vector<1x128xf32>
    %239 = vector.broadcast %238 : vector<1x128xf32> to vector<4x128xf32>
    %240 = arith.mulf %237, %239 : vector<4x128xf32>
    %241 = vector.extract_strided_slice %206 {offsets = [0, 20], sizes = [8, 4], strides = [1, 1]} : vector<8x36xf32> to vector<8x4xf32>
    %cst_79 = arith.constant dense<0.000000e+00> : vector<8x128xf32>
    %242 = tpu.matmul %241, %240, %cst_79 {dimension_numbers = #tpu.dot_dimension_numbers<[1], [0], [0], [1], [0, 0, 1, 1], [], []>} : vector<8x4xf32>, vector<4x128xf32>, vector<8x128xf32> -> vector<8x128xf32>
    %243 = arith.addf %236, %242 : vector<8x128xf32>
    %c121_i32_80 = arith.constant 121 : i32
    %244 = tpu.dynamic_rotate %205 by %c121_i32_80 dim 1 : vector<4x128xf32>, i32 -> vector<4x128xf32>
    %245 = vector.extract_strided_slice %1 {offsets = [6, 0], sizes = [1, 128], strides = [1, 1]} : vector<9x128xf32> to vector<1x128xf32>
    %246 = vector.broadcast %245 : vector<1x128xf32> to vector<4x128xf32>
    %247 = arith.mulf %244, %246 : vector<4x128xf32>
    %248 = vector.extract_strided_slice %206 {offsets = [0, 24], sizes = [8, 4], strides = [1, 1]} : vector<8x36xf32> to vector<8x4xf32>
    %cst_81 = arith.constant dense<0.000000e+00> : vector<8x128xf32>
    %249 = tpu.matmul %248, %247, %cst_81 {dimension_numbers = #tpu.dot_dimension_numbers<[1], [0], [0], [1], [0, 0, 1, 1], [], []>} : vector<8x4xf32>, vector<4x128xf32>, vector<8x128xf32> -> vector<8x128xf32>
    %250 = arith.addf %243, %249 : vector<8x128xf32>
    %c120_i32_82 = arith.constant 120 : i32
    %251 = tpu.dynamic_rotate %205 by %c120_i32_82 dim 1 : vector<4x128xf32>, i32 -> vector<4x128xf32>
    %252 = vector.extract_strided_slice %1 {offsets = [7, 0], sizes = [1, 128], strides = [1, 1]} : vector<9x128xf32> to vector<1x128xf32>
    %253 = vector.broadcast %252 : vector<1x128xf32> to vector<4x128xf32>
    %254 = arith.mulf %251, %253 : vector<4x128xf32>
    %255 = vector.extract_strided_slice %206 {offsets = [0, 28], sizes = [8, 4], strides = [1, 1]} : vector<8x36xf32> to vector<8x4xf32>
    %cst_83 = arith.constant dense<0.000000e+00> : vector<8x128xf32>
    %256 = tpu.matmul %255, %254, %cst_83 {dimension_numbers = #tpu.dot_dimension_numbers<[1], [0], [0], [1], [0, 0, 1, 1], [], []>} : vector<8x4xf32>, vector<4x128xf32>, vector<8x128xf32> -> vector<8x128xf32>
    %257 = arith.addf %250, %256 : vector<8x128xf32>
    %c119_i32_84 = arith.constant 119 : i32
    %258 = tpu.dynamic_rotate %205 by %c119_i32_84 dim 1 : vector<4x128xf32>, i32 -> vector<4x128xf32>
    %259 = vector.extract_strided_slice %1 {offsets = [8, 0], sizes = [1, 128], strides = [1, 1]} : vector<9x128xf32> to vector<1x128xf32>
    %260 = vector.broadcast %259 : vector<1x128xf32> to vector<4x128xf32>
    %261 = arith.mulf %258, %260 : vector<4x128xf32>
    %262 = vector.extract_strided_slice %206 {offsets = [0, 32], sizes = [8, 4], strides = [1, 1]} : vector<8x36xf32> to vector<8x4xf32>
    %cst_85 = arith.constant dense<0.000000e+00> : vector<8x128xf32>
    %263 = tpu.matmul %262, %261, %cst_85 {dimension_numbers = #tpu.dot_dimension_numbers<[1], [0], [0], [1], [0, 0, 1, 1], [], []>} : vector<8x4xf32>, vector<4x128xf32>, vector<8x128xf32> -> vector<8x128xf32>
    %264 = arith.addf %257, %263 : vector<8x128xf32>
    %cst_86 = arith.constant dense<0.000000e+00> : vector<8x2xf32>
    %265 = tpu.matmul %264, %0, %cst_86 {dimension_numbers = #tpu.dot_dimension_numbers<[1], [1], [0], [0], [0, 0, 1, 0], [], []>} : vector<8x128xf32>, vector<2x128xf32>, vector<8x2xf32> -> vector<8x2xf32>
    %cst_87 = arith.constant dense<0.000000e+00> : vector<2xf32>
    %266 = vector.multi_reduction <add>, %265, %cst_87 [0] : vector<8x2xf32> to vector<2xf32>
    %267 = vector.shape_cast %266 : vector<2xf32> to vector<1x2xf32>
    %cst_88 = arith.constant 0.001953125 : f32
    %268 = vector.broadcast %cst_88 : f32 to vector<1x2xf32>
    %269 = arith.mulf %267, %268 : vector<1x2xf32>
    %cst_89 = arith.constant dense<0.000000e+00> : vector<1x128xf32>
    %270 = tpu.matmul %269, %0, %cst_89 {dimension_numbers = #tpu.dot_dimension_numbers<[1], [0], [0], [1], [0, 0, 1, 1], [], []>} : vector<1x2xf32>, vector<2x128xf32>, vector<1x128xf32> -> vector<1x128xf32>
    %271 = vector.broadcast %270 : vector<1x128xf32> to vector<8x128xf32>
    %272 = arith.subf %264, %271 : vector<8x128xf32>
    %273 = arith.mulf %272, %272 : vector<8x128xf32>
    %cst_90 = arith.constant dense<0.000000e+00> : vector<8x2xf32>
    %274 = tpu.matmul %273, %0, %cst_90 {dimension_numbers = #tpu.dot_dimension_numbers<[1], [1], [0], [0], [0, 0, 1, 0], [], []>} : vector<8x128xf32>, vector<2x128xf32>, vector<8x2xf32> -> vector<8x2xf32>
    %cst_91 = arith.constant dense<0.000000e+00> : vector<2xf32>
    %275 = vector.multi_reduction <add>, %274, %cst_91 [0] : vector<8x2xf32> to vector<2xf32>
    %276 = vector.shape_cast %275 : vector<2xf32> to vector<1x2xf32>
    %cst_92 = arith.constant 0.001953125 : f32
    %277 = vector.broadcast %cst_92 : f32 to vector<1x2xf32>
    %278 = arith.mulf %276, %277 : vector<1x2xf32>
    %cst_93 = arith.constant 9.99999974E-6 : f32
    %279 = vector.broadcast %cst_93 : f32 to vector<1x2xf32>
    %280 = arith.addf %278, %279 : vector<1x2xf32>
    %281 = math.rsqrt %280 : vector<1x2xf32>
    %cst_94 = arith.constant dense<0.000000e+00> : vector<1x128xf32>
    %282 = tpu.matmul %281, %0, %cst_94 {dimension_numbers = #tpu.dot_dimension_numbers<[1], [0], [0], [1], [0, 0, 1, 1], [], []>} : vector<1x2xf32>, vector<2x128xf32>, vector<1x128xf32> -> vector<1x128xf32>
    %283 = vector.broadcast %282 : vector<1x128xf32> to vector<8x128xf32>
    %284 = arith.mulf %272, %283 : vector<8x128xf32>
    %285 = vector.broadcast %18 : vector<8x1xf32> to vector<8x128xf32>
    %286 = arith.mulf %284, %285 : vector<8x128xf32>
    %287 = vector.broadcast %19 : vector<8x1xf32> to vector<8x128xf32>
    %288 = arith.addf %286, %287 : vector<8x128xf32>
    %cst_95 = arith.constant 5.000000e-01 : f32
    %289 = vector.broadcast %cst_95 : f32 to vector<8x128xf32>
    %290 = arith.mulf %289, %288 : vector<8x128xf32>
    %cst_96 = arith.constant 0.707106769 : f32
    %291 = vector.broadcast %cst_96 : f32 to vector<8x128xf32>
    %292 = arith.mulf %288, %291 : vector<8x128xf32>
    %293 = math.erf %292 : vector<8x128xf32>
    %cst_97 = arith.constant 1.000000e+00 : f32
    %294 = vector.broadcast %cst_97 : f32 to vector<8x128xf32>
    %295 = arith.addf %294, %293 : vector<8x128xf32>
    %296 = arith.mulf %290, %295 : vector<8x128xf32>
    %c0_98 = arith.constant 0 : index
    %c0_99 = arith.constant 0 : index
    %297 = vector.load %arg6[%c0_98, %c0_99] : memref<8x72xf32, #tpu.memory_space<vmem>>, vector<8x72xf32>
    %c9_i32_100 = arith.constant 9 : i32
    %298 = tpu.dynamic_rotate %296 by %c9_i32_100 dim 1 : vector<8x128xf32>, i32 -> vector<8x128xf32>
    %299 = vector.extract_strided_slice %1 {offsets = [0, 0], sizes = [1, 128], strides = [1, 1]} : vector<9x128xf32> to vector<1x128xf32>
    %300 = vector.broadcast %299 : vector<1x128xf32> to vector<8x128xf32>
    %301 = arith.mulf %298, %300 : vector<8x128xf32>
    %302 = vector.extract_strided_slice %297 {offsets = [0, 0], sizes = [8, 8], strides = [1, 1]} : vector<8x72xf32> to vector<8x8xf32>
    %cst_101 = arith.constant dense<0.000000e+00> : vector<8x128xf32>
    %303 = tpu.matmul %302, %301, %cst_101 {dimension_numbers = #tpu.dot_dimension_numbers<[1], [0], [0], [1], [0, 0, 1, 1], [], []>} : vector<8x8xf32>, vector<8x128xf32>, vector<8x128xf32> -> vector<8x128xf32>
    %c8_i32_102 = arith.constant 8 : i32
    %304 = tpu.dynamic_rotate %296 by %c8_i32_102 dim 1 : vector<8x128xf32>, i32 -> vector<8x128xf32>
    %305 = vector.extract_strided_slice %1 {offsets = [1, 0], sizes = [1, 128], strides = [1, 1]} : vector<9x128xf32> to vector<1x128xf32>
    %306 = vector.broadcast %305 : vector<1x128xf32> to vector<8x128xf32>
    %307 = arith.mulf %304, %306 : vector<8x128xf32>
    %308 = vector.extract_strided_slice %297 {offsets = [0, 8], sizes = [8, 8], strides = [1, 1]} : vector<8x72xf32> to vector<8x8xf32>
    %cst_103 = arith.constant dense<0.000000e+00> : vector<8x128xf32>
    %309 = tpu.matmul %308, %307, %cst_103 {dimension_numbers = #tpu.dot_dimension_numbers<[1], [0], [0], [1], [0, 0, 1, 1], [], []>} : vector<8x8xf32>, vector<8x128xf32>, vector<8x128xf32> -> vector<8x128xf32>
    %310 = arith.addf %303, %309 : vector<8x128xf32>
    %c7_i32_104 = arith.constant 7 : i32
    %311 = tpu.dynamic_rotate %296 by %c7_i32_104 dim 1 : vector<8x128xf32>, i32 -> vector<8x128xf32>
    %312 = vector.extract_strided_slice %1 {offsets = [2, 0], sizes = [1, 128], strides = [1, 1]} : vector<9x128xf32> to vector<1x128xf32>
    %313 = vector.broadcast %312 : vector<1x128xf32> to vector<8x128xf32>
    %314 = arith.mulf %311, %313 : vector<8x128xf32>
    %315 = vector.extract_strided_slice %297 {offsets = [0, 16], sizes = [8, 8], strides = [1, 1]} : vector<8x72xf32> to vector<8x8xf32>
    %cst_105 = arith.constant dense<0.000000e+00> : vector<8x128xf32>
    %316 = tpu.matmul %315, %314, %cst_105 {dimension_numbers = #tpu.dot_dimension_numbers<[1], [0], [0], [1], [0, 0, 1, 1], [], []>} : vector<8x8xf32>, vector<8x128xf32>, vector<8x128xf32> -> vector<8x128xf32>
    %317 = arith.addf %310, %316 : vector<8x128xf32>
    %c1_i32_106 = arith.constant 1 : i32
    %318 = tpu.dynamic_rotate %296 by %c1_i32_106 dim 1 : vector<8x128xf32>, i32 -> vector<8x128xf32>
    %319 = vector.extract_strided_slice %1 {offsets = [3, 0], sizes = [1, 128], strides = [1, 1]} : vector<9x128xf32> to vector<1x128xf32>
    %320 = vector.broadcast %319 : vector<1x128xf32> to vector<8x128xf32>
    %321 = arith.mulf %318, %320 : vector<8x128xf32>
    %322 = vector.extract_strided_slice %297 {offsets = [0, 24], sizes = [8, 8], strides = [1, 1]} : vector<8x72xf32> to vector<8x8xf32>
    %cst_107 = arith.constant dense<0.000000e+00> : vector<8x128xf32>
    %323 = tpu.matmul %322, %321, %cst_107 {dimension_numbers = #tpu.dot_dimension_numbers<[1], [0], [0], [1], [0, 0, 1, 1], [], []>} : vector<8x8xf32>, vector<8x128xf32>, vector<8x128xf32> -> vector<8x128xf32>
    %324 = arith.addf %317, %323 : vector<8x128xf32>
    %325 = vector.extract_strided_slice %297 {offsets = [0, 32], sizes = [8, 8], strides = [1, 1]} : vector<8x72xf32> to vector<8x8xf32>
    %cst_108 = arith.constant dense<0.000000e+00> : vector<8x128xf32>
    %326 = tpu.matmul %325, %296, %cst_108 {dimension_numbers = #tpu.dot_dimension_numbers<[1], [0], [0], [1], [0, 0, 1, 1], [], []>} : vector<8x8xf32>, vector<8x128xf32>, vector<8x128xf32> -> vector<8x128xf32>
    %327 = arith.addf %324, %326 : vector<8x128xf32>
    %c127_i32_109 = arith.constant 127 : i32
    %328 = tpu.dynamic_rotate %296 by %c127_i32_109 dim 1 : vector<8x128xf32>, i32 -> vector<8x128xf32>
    %329 = vector.extract_strided_slice %1 {offsets = [5, 0], sizes = [1, 128], strides = [1, 1]} : vector<9x128xf32> to vector<1x128xf32>
    %330 = vector.broadcast %329 : vector<1x128xf32> to vector<8x128xf32>
    %331 = arith.mulf %328, %330 : vector<8x128xf32>
    %332 = vector.extract_strided_slice %297 {offsets = [0, 40], sizes = [8, 8], strides = [1, 1]} : vector<8x72xf32> to vector<8x8xf32>
    %cst_110 = arith.constant dense<0.000000e+00> : vector<8x128xf32>
    %333 = tpu.matmul %332, %331, %cst_110 {dimension_numbers = #tpu.dot_dimension_numbers<[1], [0], [0], [1], [0, 0, 1, 1], [], []>} : vector<8x8xf32>, vector<8x128xf32>, vector<8x128xf32> -> vector<8x128xf32>
    %334 = arith.addf %327, %333 : vector<8x128xf32>
    %c121_i32_111 = arith.constant 121 : i32
    %335 = tpu.dynamic_rotate %296 by %c121_i32_111 dim 1 : vector<8x128xf32>, i32 -> vector<8x128xf32>
    %336 = vector.extract_strided_slice %1 {offsets = [6, 0], sizes = [1, 128], strides = [1, 1]} : vector<9x128xf32> to vector<1x128xf32>
    %337 = vector.broadcast %336 : vector<1x128xf32> to vector<8x128xf32>
    %338 = arith.mulf %335, %337 : vector<8x128xf32>
    %339 = vector.extract_strided_slice %297 {offsets = [0, 48], sizes = [8, 8], strides = [1, 1]} : vector<8x72xf32> to vector<8x8xf32>
    %cst_112 = arith.constant dense<0.000000e+00> : vector<8x128xf32>
    %340 = tpu.matmul %339, %338, %cst_112 {dimension_numbers = #tpu.dot_dimension_numbers<[1], [0], [0], [1], [0, 0, 1, 1], [], []>} : vector<8x8xf32>, vector<8x128xf32>, vector<8x128xf32> -> vector<8x128xf32>
    %341 = arith.addf %334, %340 : vector<8x128xf32>
    %c120_i32_113 = arith.constant 120 : i32
    %342 = tpu.dynamic_rotate %296 by %c120_i32_113 dim 1 : vector<8x128xf32>, i32 -> vector<8x128xf32>
    %343 = vector.extract_strided_slice %1 {offsets = [7, 0], sizes = [1, 128], strides = [1, 1]} : vector<9x128xf32> to vector<1x128xf32>
    %344 = vector.broadcast %343 : vector<1x128xf32> to vector<8x128xf32>
    %345 = arith.mulf %342, %344 : vector<8x128xf32>
    %346 = vector.extract_strided_slice %297 {offsets = [0, 56], sizes = [8, 8], strides = [1, 1]} : vector<8x72xf32> to vector<8x8xf32>
    %cst_114 = arith.constant dense<0.000000e+00> : vector<8x128xf32>
    %347 = tpu.matmul %346, %345, %cst_114 {dimension_numbers = #tpu.dot_dimension_numbers<[1], [0], [0], [1], [0, 0, 1, 1], [], []>} : vector<8x8xf32>, vector<8x128xf32>, vector<8x128xf32> -> vector<8x128xf32>
    %348 = arith.addf %341, %347 : vector<8x128xf32>
    %c119_i32_115 = arith.constant 119 : i32
    %349 = tpu.dynamic_rotate %296 by %c119_i32_115 dim 1 : vector<8x128xf32>, i32 -> vector<8x128xf32>
    %350 = vector.extract_strided_slice %1 {offsets = [8, 0], sizes = [1, 128], strides = [1, 1]} : vector<9x128xf32> to vector<1x128xf32>
    %351 = vector.broadcast %350 : vector<1x128xf32> to vector<8x128xf32>
    %352 = arith.mulf %349, %351 : vector<8x128xf32>
    %353 = vector.extract_strided_slice %297 {offsets = [0, 64], sizes = [8, 8], strides = [1, 1]} : vector<8x72xf32> to vector<8x8xf32>
    %cst_116 = arith.constant dense<0.000000e+00> : vector<8x128xf32>
    %354 = tpu.matmul %353, %352, %cst_116 {dimension_numbers = #tpu.dot_dimension_numbers<[1], [0], [0], [1], [0, 0, 1, 1], [], []>} : vector<8x8xf32>, vector<8x128xf32>, vector<8x128xf32> -> vector<8x128xf32>
    %355 = arith.addf %348, %354 : vector<8x128xf32>
    %cst_117 = arith.constant dense<0.000000e+00> : vector<8x2xf32>
    %356 = tpu.matmul %355, %0, %cst_117 {dimension_numbers = #tpu.dot_dimension_numbers<[1], [1], [0], [0], [0, 0, 1, 0], [], []>} : vector<8x128xf32>, vector<2x128xf32>, vector<8x2xf32> -> vector<8x2xf32>
    %cst_118 = arith.constant dense<0.000000e+00> : vector<2xf32>
    %357 = vector.multi_reduction <add>, %356, %cst_118 [0] : vector<8x2xf32> to vector<2xf32>
    %358 = vector.shape_cast %357 : vector<2xf32> to vector<1x2xf32>
    %cst_119 = arith.constant 0.001953125 : f32
    %359 = vector.broadcast %cst_119 : f32 to vector<1x2xf32>
    %360 = arith.mulf %358, %359 : vector<1x2xf32>
    %cst_120 = arith.constant dense<0.000000e+00> : vector<1x128xf32>
    %361 = tpu.matmul %360, %0, %cst_120 {dimension_numbers = #tpu.dot_dimension_numbers<[1], [0], [0], [1], [0, 0, 1, 1], [], []>} : vector<1x2xf32>, vector<2x128xf32>, vector<1x128xf32> -> vector<1x128xf32>
    %362 = vector.broadcast %361 : vector<1x128xf32> to vector<8x128xf32>
    %363 = arith.subf %355, %362 : vector<8x128xf32>
    %364 = arith.mulf %363, %363 : vector<8x128xf32>
    %cst_121 = arith.constant dense<0.000000e+00> : vector<8x2xf32>
    %365 = tpu.matmul %364, %0, %cst_121 {dimension_numbers = #tpu.dot_dimension_numbers<[1], [1], [0], [0], [0, 0, 1, 0], [], []>} : vector<8x128xf32>, vector<2x128xf32>, vector<8x2xf32> -> vector<8x2xf32>
    %cst_122 = arith.constant dense<0.000000e+00> : vector<2xf32>
    %366 = vector.multi_reduction <add>, %365, %cst_122 [0] : vector<8x2xf32> to vector<2xf32>
    %367 = vector.shape_cast %366 : vector<2xf32> to vector<1x2xf32>
    %cst_123 = arith.constant 0.001953125 : f32
    %368 = vector.broadcast %cst_123 : f32 to vector<1x2xf32>
    %369 = arith.mulf %367, %368 : vector<1x2xf32>
    %cst_124 = arith.constant 9.99999974E-6 : f32
    %370 = vector.broadcast %cst_124 : f32 to vector<1x2xf32>
    %371 = arith.addf %369, %370 : vector<1x2xf32>
    %372 = math.rsqrt %371 : vector<1x2xf32>
    %cst_125 = arith.constant dense<0.000000e+00> : vector<1x128xf32>
    %373 = tpu.matmul %372, %0, %cst_125 {dimension_numbers = #tpu.dot_dimension_numbers<[1], [0], [0], [1], [0, 0, 1, 1], [], []>} : vector<1x2xf32>, vector<2x128xf32>, vector<1x128xf32> -> vector<1x128xf32>
    %374 = vector.broadcast %373 : vector<1x128xf32> to vector<8x128xf32>
    %375 = arith.mulf %363, %374 : vector<8x128xf32>
    %376 = vector.broadcast %20 : vector<8x1xf32> to vector<8x128xf32>
    %377 = arith.mulf %375, %376 : vector<8x128xf32>
    %378 = vector.broadcast %21 : vector<8x1xf32> to vector<8x128xf32>
    %379 = arith.addf %377, %378 : vector<8x128xf32>
    %c0_126 = arith.constant 0 : index
    %c0_127 = arith.constant 0 : index
    %380 = vector.load %arg9[%c0_126, %c0_127] : memref<8x640xf32, #tpu.memory_space<vmem>>, vector<8x640xf32>
    %c0_128 = arith.constant 0 : index
    %c0_129 = arith.constant 0 : index
    %381 = vector.load %arg8[%c0_128, %c0_129] : memref<2x640xf32, #tpu.memory_space<vmem>>, vector<2x640xf32>
    %382 = arith.negf %381 : vector<2x640xf32>
    %383 = math.exp %382 : vector<2x640xf32>
    %cst_130 = arith.constant 1.000000e+00 : f32
    %384 = vector.broadcast %cst_130 : f32 to vector<2x640xf32>
    %385 = arith.addf %384, %383 : vector<2x640xf32>
    %386 = arith.divf %384, %385 : vector<2x640xf32>
    %387 = arith.mulf %381, %386 : vector<2x640xf32>
    %cst_131 = arith.constant dense<0.000000e+00> : vector<8x2xf32>
    %388 = tpu.matmul %380, %387, %cst_131 {dimension_numbers = #tpu.dot_dimension_numbers<[1], [1], [0], [0], [0, 0, 1, 0], [], []>} : vector<8x640xf32>, vector<2x640xf32>, vector<8x2xf32> -> vector<8x2xf32>
    %389 = vector.broadcast %22 : vector<8x1xf32> to vector<8x2xf32>
    %390 = arith.addf %388, %389 : vector<8x2xf32>
    %cst_132 = arith.constant dense<0.000000e+00> : vector<8x128xf32>
    %391 = tpu.matmul %390, %0, %cst_132 {dimension_numbers = #tpu.dot_dimension_numbers<[1], [0], [0], [1], [0, 0, 1, 1], [], []>} : vector<8x2xf32>, vector<2x128xf32>, vector<8x128xf32> -> vector<8x128xf32>
    %392 = arith.addf %379, %391 : vector<8x128xf32>
    %c0_133 = arith.constant 0 : index
    %c0_134 = arith.constant 0 : index
    %393 = vector.load %arg10[%c0_133, %c0_134] : memref<8x128xf32, #tpu.memory_space<vmem>>, vector<8x128xf32>
    tpu.vector_store %arg10[%c0_133, %c0_134], %392 {strides = array<i32>} : memref<8x128xf32, #tpu.memory_space<vmem>>, vector<8x128xf32>,
    return
  }
}

</mosaic_0001>

<bundles_post_ra>
// kernel: down_mass_forward.1
= control target key start
LH: loop header
LB: loop body
LE: loop exit
PB: predicated region body
PF: predicated region fallthrough
CT: control target
= control target key end

     0   :  { %s2129_s21 = smov 1   ;;  %s2130_s22 = smov 7   ;;  %vm64_vm0 = vcmask 1043456   ;;  %vm61_vm1 = vcmask 31744   ;;  %vm366_vm2 = vcmask 1041408   ;;  %vm353_vm3 = vcmask 11264   ;;  %s2562_s0 = inlined_call_operand.vmem [shape: f32[4,4,128], index: 0, kind: input, shape index: {}]   ;;  %s2563_s1 = inlined_call_operand.vmem [shape: f32[9,128], index: 1, kind: input, shape index: {}]   ;;  %s2564_s3 = inlined_call_operand.vmem [shape: f32[4,36], index: 3, kind: input, shape index: {}]   ;;  %s2565_s2 = inlined_call_operand.vmem [shape: f32[2,128], index: 2, kind: input, shape index: {}]   ;;  %s2566_s7 = inlined_call_operand.vmem [shape: f32[8,9], index: 7, kind: input, shape index: {}]   ;;  %s2567_s4 = inlined_call_operand.vmem [shape: f32[4,36], index: 4, kind: input, shape index: {}]   ;;  %s2568_s5 = inlined_call_operand.vmem [shape: f32[8,36], index: 5, kind: input, shape index: {}]   ;;  %s2569_s6 = inlined_call_operand.vmem [shape: f32[8,72], index: 6, kind: input, shape index: {}]   ;;  %s2570_s8 = inlined_call_operand.vmem [shape: f32[2,640], index: 8, kind: input, shape index: {}]   ;;  %s2571_s9 = inlined_call_operand.vmem [shape: f32[8,640], index: 9, kind: input, shape index: {}]   ;;  %s2572_s10 = inlined_call_operand.vmem [shape: f32[8,128], index: 10, kind: output, shape index: {}]  }
   0x1   :  { %v39_v0 = vld [vmem:[%s2562_s0] sm:$0xf]  ;;  %v1976_v1 = vld [vmem:[%s2562_s0 + $0x4] sm:$0xf]  ;;  %v1977_v2 = vld [vmem:[%s2562_s0 + $0x8] sm:$0xf] }
   0x2   :  { %v42_v3 = vmax.f32 %v39_v0, %v1976_v1  ;;  %v1978_v4 = vld [vmem:[%s2562_s0 + $0xc] sm:$0xf]  ;;  %s2131_s23 = smov 9   ;;  %v49_v7 = vld [vmem:[%s2564_s3] sm:$0xf]  ;;  %s2132_s0 = smov 120  }
   0x3   :  { %v47_v5 = vmax.f32 %v1977_v2, %v1978_v4  ;;  %s2133_s26 = smov 8   ;;  %s2134_s27 = smov 124   ;;  %v36_v8 = vld [vmem:[%s2563_s1] sm:$0xff]  ;;  %v2278_v24 = vld [vmem:[%s2563_s1 + $0x8] ss:$0 sm:$0xff]  ;;  %vm362_vm4 = vcmask 15360  }
   0x4   :  { %s2135_s28 = smov 121   ;;  %s2136_s29 = smov 116   ;;  %v2256_v9 = vperm.slane %v36_v8, 0  ;;  %v2261_v14 = vperm.slane %v36_v8, 7  ;;  %v2263_v15 = vperm.slane %v36_v8, 3  ;;  %v2265_v16 = vperm.slane %v36_v8, 2 }
   0x5   :  { %v2224_v6 = vmax.f32 %v42_v3, %v47_v5  ;;  %s2137_s3 = smov 127   ;;  %s2138_s30 = smov 104   ;;  %v2273_v23 = vperm.slane %v36_v8, 1  ;;  %v2285_v30 = vperm.slane %v36_v8, 6  ;;  %v2294_v34 = vperm.slane %v36_v8, 5 }
   0x6   :  { %s2139_s11 = smov 112   ;;  %s2140_s12 = smov 108   ;;  %v2305_v41 = vld [vmem:[%s2565_s2] sm:$0x3] }
   0x7   :  { %145 = vrot.lane.b32.xlu1 %v2224_v6, %s2129_s21  ;;  %113 = vrot.lane.b32.xlu0 %v2224_v6, %s2130_s22  ;;  %s2141_s13 = smov 100   ;;  %s2142_s14 = smov 119  }
   0x8   :  { %50 = vrot.lane.b32.xlu2 %v2224_v6, %s2131_s23  ;;  %s2143_s15 = smov 96  }
   0xf   :  { %117 = vrot.lane.b32.xlu1 %v49_v7, %s2132_s0  ;;  %54 = vrot.lane.b32.xlu0 %v2224_v6, %s2133_s26 }
  0x10   :  { %59 = vrot.lane.b32.xlu2 %v49_v7, %s2134_s27 }
  0x17   :  { %237 = vrot.lane.b32.xlu1 %v2224_v6, %s2135_s28  ;;  %149 = vrot.lane.b32.xlu0 %v49_v7, %s2136_s29 }
  0x18   :  { %269 = vrot.lane.b32.xlu2 %v2224_v6, %s2132_s0 }
  0x1f   :  { %205 = vrot.lane.b32.xlu1 %v2224_v6, %s2137_s3  ;;  %241 = vrot.lane.b32.xlu0 %v49_v7, %s2138_s30 }
  0x20   :  { %177 = vrot.lane.b32.xlu2 %v49_v7, %s2139_s11 }
  0x27   :  { %209 = vrot.lane.b32.xlu1 %v49_v7, %s2140_s12  ;;  %273 = vrot.lane.b32.xlu0 %v49_v7, %s2141_s13 }
  0x28   :  { %301 = vrot.lane.b32.xlu2 %v2224_v6, %s2142_s14 }
  0x2f   :  { %305 = vrot.lane.b32.xlu0 %v49_v7, %s2143_s15 }
  0x62   :  { %v51_v10 = vpop.permute.xlu2 %50 }
  0x63   :  { %v53_v11 = vmul.f32 %v2256_v9, %v51_v10 }
  0x65   :  { %1981 = vmatpush.msk.msra.mxu1 %vm64_vm0, %v53_v11 }
  0x66   :  { %1982 = vmatmul.msk.f32.vlgmr.msra.gmra.mxu1 %vm61_vm1, %v49_v7 }
  0x6a   :  { %v60_v12 = vpop.permute.xlu2 %59 }
  0x72   :  { %v270_v13 = vpop.permute.xlu2 %269 }
  0x73   :  { %v272_v19 = vmul.f32 %v2261_v14, %v270_v13 }
  0x79   :  { %v146_v17 = vpop.permute.xlu1 %145  ;;  %v114_v18 = vpop.permute.xlu0 %113 }
  0x7a   :  { %v148_v20 = vmul.f32 %v2263_v15, %v146_v17  ;;  %v116_v21 = vmul.f32 %v2265_v16, %v114_v18  ;;  %v178_v22 = vpop.permute.xlu2 %177  ;;  %v2319_v17 = vld [vmem:[%s2566_s7] sm:$0xff]  ;;  %v2144_v18 = vmov 0  }
  0x7b   :  { %2093 = vset.pattern.permute.xlu1 %v2144_v18 }
  0x7c   :  { %1983 = vmatpush.msk.msra.mxu2 %vm64_vm0, %v116_v21  ;;  %1985 = vmatpush.msk.msra.mxu3 %vm64_vm0, %v148_v20 }
  0x7d   :  { %459 = vperm.xlu1 %2093, %v2319_v17  }
  0x7e   :  { %1993 = vmatpush.msk.msrb.mxu3 %vm64_vm0, %v272_v19  ;;  %v2145_v19 = vmov 1  }
  0x7f   :  { %2094 = vset.pattern.permute.xlu2 %v2145_v19 }
  0x80   :  { %464 = vperm.xlu2 %2094, %v2319_v17  }
  0x81   :  { %v118_v25 = vpop.permute.xlu1 %117  ;;  %v55_v26 = vpop.permute.xlu0 %54 }
  0x82   :  { %v57_v27 = vmul.f32 %v2273_v23, %v55_v26  ;;  %1984 = vmatmul.msk.f32.vlgmr.msra.gmra.mxu2 %vm61_vm1, %v118_v25  ;;  %v302_v28 = vpop.permute.xlu2 %301 }
  0x83   :  { %v304_v29 = vmul.f32 %v2278_v24, %v302_v28 }
  0x84   :  { %1979 = vmatpush.msk.msra.mxu0 %vm64_vm0, %v57_v27 }
  0x85   :  { %1980 = vmatmul.msk.f32.vlgmr.msra.gmra.mxu0 %vm61_vm1, %v60_v12 }
  0x86   :  { %1987 = vmatpush.msk.msrb.mxu0 %vm64_vm0, %v2224_v6 }
  0x88   :  { %1995 = vmatpush.msk.msra.mxu0 %vm64_vm0, %v304_v29 }
  0x89   :  { %v238_v31 = vpop.permute.xlu1 %237  ;;  %v150_v32 = vpop.permute.xlu0 %149 }
  0x8a   :  { %v240_v33 = vmul.f32 %v2285_v30, %v238_v31  ;;  %1986 = vmatmul.msk.f32.vlgmr.msra.gmra.mxu3 %vm61_vm1, %v150_v32 }
  0x8b   :  { %408 = vmatpush.xpose.msra.mxu3 %v2305_v41 }
  0x8c   :  { %1991 = vmatpush.msk.msrb.mxu2 %vm64_vm0, %v240_v33 }
  0x8d   :  { %1988 = vmatmul.msk.f32.vlgmr.msrb.gmra.mxu0 %vm61_vm1, %v178_v22 }
  0x8e   :  { %1997 = vmatpush.msk.msra.mxu2 %vm366_vm2, %v2305_v41  ;;  %1999 = vmatpush.msk.msrb.mxu0 %vm366_vm2, %v2305_v41 }
  0x91   :  { %v206_v35 = vpop.permute.xlu1 %205  ;;  %v242_v36 = vpop.permute.xlu0 %241 }
  0x92   :  { %v208_v37 = vmul.f32 %v2294_v34, %v206_v35  ;;  %1992 = vmatmul.msk.f32.vlgmr.msrb.gmra.mxu2 %vm61_vm1, %v242_v36 }
  0x94   :  { %1989 = vmatpush.msk.msrb.mxu1 %vm64_vm0, %v208_v37 }
  0x96   :  { %348 = vmatpush.xpose.msra.mxu1 %v2305_v41 }
  0x99   :  { %v210_v38 = vpop.permute.xlu1 %209  ;;  %v274_v39 = vpop.permute.xlu0 %273 }
  0x9a   :  { %1990 = vmatmul.msk.f32.vlgmr.msrb.gmra.mxu1 %vm61_vm1, %v210_v38  ;;  %1994 = vmatmul.msk.f32.vlgmr.msrb.gmra.mxu3 %vm61_vm1, %v274_v39 }
  0xa1   :  { %v306_v40 = vpop.permute.xlu0 %305 }
  0xa2   :  { %1996 = vmatmul.msk.f32.vlgmr.msra.gmra.mxu0 %vm61_vm1, %v306_v40 }
  0xe3   :  { %v110_v43 = vpop.f32.mrf.mxu1 }
  0xef   :  { %v460_v39 = vpop.permute.xlu1 %459 }
 0x102   :  { %v85_v42 = vpop.f32.mrf.mxu0 }
 0x103   :  { %v111_v44 = vadd.f32 %v110_v43, %v85_v42  ;;  %v465_v42 = vpop.permute.xlu2 %464 }
 0x105   :  { %v141_v45 = vpop.f32.mrf.mxu2 }
 0x106   :  { %v144_v47 = vadd.f32 %v141_v45, %v111_v44 }
 0x10a   :  { %v201_v49 = vpop.f32.mrf.mxu0 }
 0x10d   :  { %v173_v46 = vpop.f32.mrf.mxu3 }
 0x10e   :  { %v176_v48 = vadd.f32 %v173_v46, %v144_v47  ;;  %v2327_v47 = vld [vmem:[%s2567_s4] sm:$0xf] }
 0x10f   :  { %575 = vrot.lane.b32.xlu0 %v2327_v47, %s2132_s0  ;;  %665 = vrot.lane.b32.xlu2 %v2327_v47, %s2140_s12 }
 0x110   :  { %v204_v50 = vadd.f32 %v201_v49, %v176_v48  ;;  %520 = vrot.lane.b32.xlu1 %v2327_v47, %s2134_s27 }
 0x115   :  { %v265_v53 = vpop.f32.mrf.mxu2 }
 0x117   :  { %v233_v51 = vpop.f32.mrf.mxu1  ;;  %606 = vrot.lane.b32.xlu0 %v2327_v47, %s2136_s29 }
 0x118   :  { %v236_v52 = vadd.f32 %v233_v51, %v204_v50 }
 0x11a   :  { %v268_v54 = vadd.f32 %v265_v53, %v236_v52 }
 0x11d   :  { %v297_v55 = vpop.f32.mrf.mxu3 }
 0x11e   :  { %v300_v56 = vadd.f32 %v297_v55, %v268_v54 }
 0x11f   :  { %v329_v57 = vpop.f32.mrf.mxu0 }
 0x120   :  { %v332_v58 = vadd.f32 %v329_v57, %v300_v56 }
 0x122   :  { %349 = vmatmul.f32.vlgmr.msra.gmra.mxu1 %v332_v58 }
 0x19f   :  { %v350_v59 = vpop.f32.mrf.mxu1 }
 0x1a0   :  { %v354_v60 = vsel %vm353_vm3, %v350_v59, 0.0 }
 0x1a1   :  { %v355_v61 = vrot.slane %v354_v60, 4 }
 0x1a3   :  { %v356_v62 = vadd.f32 %v355_v61, %v354_v60 }
 0x1a5   :  { %v357_v63 = vrot.slane %v356_v62, 2 }
 0x1a7   :  { %v358_v0 = vadd.f32 %v357_v63, %v356_v62 }
 0x1a9   :  { %v359_v1 = vrot.slane %v358_v0, 1 }
 0x1ab   :  { %v360_v2 = vadd.f32 %v359_v1, %v358_v0 }
 0x1ad   :  { %v361_v3 = vmul.f32 0.00390625, %v360_v2 }
 0x1af   :  { %1998 = vmatmul.msk.f32.vlgmr.msra.gmra.mxu2 %vm362_vm4, %v361_v3 }
 0x232   :  { %v387_v4 = vpop.f32.mrf.mxu2 }
 0x233   :  { %v390_v5 = vperm.slane %v387_v4, 0 }
 0x235   :  { %v391_v7 = vsub.f32 %v332_v58, %v390_v5 }
 0x237   :  { %v392_v8 = vmul.f32 %v391_v7, %v391_v7 }
 0x239   :  { %409 = vmatmul.f32.vlgmr.msra.gmra.mxu3 %v392_v8 }
 0x2bc   :  { %v410_v10 = vpop.f32.mrf.mxu3 }
 0x2bd   :  { %v413_v11 = vsel %vm353_vm3, %v410_v10, 0.0 }
 0x2be   :  { %v414_v12 = vrot.slane %v413_v11, 4 }
 0x2c0   :  { %v415_v13 = vadd.f32 %v414_v12, %v413_v11 }
 0x2c2   :  { %v416_v20 = vrot.slane %v415_v13, 2 }
 0x2c4   :  { %v417_v21 = vadd.f32 %v416_v20, %v415_v13 }
 0x2c6   :  { %v418_v22 = vrot.slane %v417_v21, 1 }
 0x2c8   :  { %v419_v25 = vadd.f32 %v418_v22, %v417_v21 }
 0x2ca   :  { %v420_v26 = vmul.f32 0.00390625, %v419_v25 }
 0x2cc   :  { %v421_v27 = vadd.f32 1e-05, %v420_v26 }
 0x2ce   :  { %2104 = vrsqrt.f32 %v421_v27  ;;  %vm428_vm6 = vweird.f32 %v421_v27 }
 0x2d4   :  { %v2105_v28 = vpop.eup %2104 }
 0x2d5   :  { %v423_v29 = vmul.f32 %v2105_v28, %v421_v27  ;;  %vm429_vm5 = vweird.f32 %v2105_v28 }
 0x2d6   :  { %vm430_vm7 = vmor %vm428_vm6, %vm429_vm5 }
 0x2d7   :  { %v424_v31 = vmul.f32 %v2105_v28, %v423_v29  ;;  %v666_v29 = vpop.permute.xlu2 %665 }
 0x2d9   :  { %v425_v32 = vmul.f32 0.5, %v424_v31 }
 0x2db   :  { %v426_v33 = vsub.f32 1.5, %v425_v32 }
 0x2dd   :  { %v427_v35 = vmul.f32 %v2105_v28, %v426_v33  ;;  %v521_v33 = vpop.permute.xlu1 %520 }
 0x2df   :  { %v431_v36 = vsel %vm430_vm7, %v2105_v28, %v427_v35  ;;  %v576_v35 = vpop.permute.xlu0 %575 }
 0x2e0   :  { %2000 = vmatmul.msk.f32.vlgmr.msrb.gmra.mxu0 %vm362_vm4, %v431_v36 }
 0x35d   :  { %v452_v37 = vpop.f32.mrf.mxu0 }
 0x35e   :  { %v455_v38 = vperm.slane %v452_v37, 0  ;;  %v607_v37 = vpop.permute.xlu0 %606 }
 0x360   :  { %v456_v40 = vmul.f32 %v455_v38, %v391_v7 }
 0x362   :  { %v462_v43 = vmul.f32 %v460_v39, %v456_v40 }
 0x364   :  { %v467_v44 = vadd.f32 %v465_v42, %v462_v43 }
 0x366   :  { %v469_v45 = vmul.f32 0.70710677, %v467_v44  ;;  %v468_v26 = vmul.f32 0.5, %v467_v44 }
 0x368   :  { %v470_v46 = vmul.f32 %v469_v45, %v469_v45 }
 0x36a   :  { %v471_v48 = vmin.f32 %v470_v46, 16.0 }
 0x36c   :  { %v472_v49 = vmul.f32 2.1237322e-06, %v471_v48  ;;  %v483_v50 = vmul.f32 3.8918573e-05, %v471_v48 }
 0x36e   :  { %v473_v51 = vadd.f32 0.00028619796, %v472_v49  ;;  %v484_v52 = vadd.f32 0.001143296, %v483_v50 }
 0x370   :  { %v474_v53 = vmul.f32 %v473_v51, %v471_v48  ;;  %v485_v54 = vmul.f32 %v484_v52, %v471_v48 }
 0x372   :  { %v486_v55 = vadd.f32 0.014752088, %v485_v54  ;;  %v475_v56 = vadd.f32 0.0036580483, %v474_v53 }
 0x374   :  { %v487_v57 = vmul.f32 %v486_v55, %v471_v48  ;;  %v476_v59 = vmul.f32 %v475_v56, %v471_v48 }
 0x376   :  { %v488_v58 = vadd.f32 0.112945676, %v487_v57  ;;  %v477_v62 = vadd.f32 0.05243302, %v476_v59 }
 0x378   :  { %v489_v60 = vmul.f32 %v488_v58, %v471_v48  ;;  %v478_v1 = vmul.f32 %v477_v62, %v471_v48 }
 0x37a   :  { %v490_v61 = vadd.f32 0.4994258, %v489_v60  ;;  %v479_v2 = vadd.f32 0.18741608, %v478_v1 }
 0x37c   :  { %v491_v63 = vmul.f32 %v490_v61, %v471_v48  ;;  %v480_v4 = vmul.f32 %v479_v2, %v471_v48 }
 0x37e   :  { %v492_v0 = vadd.f32 1.0, %v491_v63  ;;  %v481_v10 = vadd.f32 1.1283791, %v480_v4 }
 0x380   :  { %2106 = vrcp.f32 %v492_v0  ;;  %v504_v8 = vand.u32 2147483648, %v492_v0  ;;  %v502_v12 = vand.u32 2147483647, %v492_v0  ;;  %vm498_vm9 = vweird.f32 %v492_v0 }
 0x381   :  { %v482_v19 = vmul.f32 %v481_v10, %v469_v45 }
 0x382   :  { %v505_v18 = vor.u32 1.1754944e-38, %v504_v8  ;;  %vm503_vm11 = vcmp.eq.f32.partialorder %v502_v12, 8.507059e+37 }
 0x386   :  { %v2107_v3 = vpop.eup %2106 }
 0x387   :  { %v494_v5 = vmul.f32 %v2107_v3, %v492_v0  ;;  %vm499_vm8 = vweird.f32 %v2107_v3 }
 0x388   :  { %vm500_vm10 = vmor %vm498_vm9, %vm499_vm8 }
 0x389   :  { %v495_v7 = vsub.f32 1.0, %v494_v5 }
 0x38b   :  { %v496_v11 = vmul.f32 %v2107_v3, %v495_v7 }
 0x38d   :  { %v497_v13 = vadd.f32 %v2107_v3, %v496_v11 }
 0x38f   :  { %v501_v20 = vsel %vm500_vm10, %v2107_v3, %v497_v13 }
 0x390   :  { %v506_v21 = vsel %vm503_vm11, %v505_v18, %v501_v20 }
 0x391   :  { %v507_v22 = vmul.f32 %v506_v21, %v482_v19 }
 0x393   :  { %v2001_v25 = vclamps-f32 %v507_v22, 1.0 }
 0x395   :  { %v510_v27 = vadd.f32 1.0, %v2001_v25 }
 0x397   :  { %v511_v28 = vmul.f32 %v510_v27, %v468_v26 }
 0x399   :  { %516 = vrot.lane.b32.xlu2 %v511_v28, %s2133_s26  ;;  %572 = vrot.lane.b32.xlu1 %v511_v28, %s2130_s22 }
 0x39a   :  { %513 = vrot.lane.b32.xlu0 %v511_v28, %s2131_s23 }
 0x3a1   :  { %662 = vrot.lane.b32.xlu2 %v511_v28, %s2137_s3  ;;  %693 = vrot.lane.b32.xlu1 %v511_v28, %s2135_s28 }
 0x3a2   :  { %603 = vrot.lane.b32.xlu0 %v511_v28, %s2129_s21 }
 0x3a9   :  { %696 = vrot.lane.b32.xlu1 %v2327_v47, %s2138_s30  ;;  %634 = vrot.lane.b32.xlu2 %v2327_v47, %s2139_s11 }
 0x3aa   :  { %724 = vrot.lane.b32.xlu0 %v511_v28, %s2132_s0 }
 0x3b1   :  { %755 = vrot.lane.b32.xlu1 %v511_v28, %s2142_s14  ;;  %727 = vrot.lane.b32.xlu2 %v2327_v47, %s2141_s13 }
 0x3b2   :  { %758 = vrot.lane.b32.xlu0 %v2327_v47, %s2143_s15 }
 0x3f3   :  { %v517_v31 = vpop.permute.xlu2 %516 }
 0x3f4   :  { %v518_v32 = vmul.f32 %v517_v31, %v2273_v23 }
 0x3f6   :  { %2002 = vmatpush.msk.msrb.mxu1 %vm64_vm0, %v518_v32 }
 0x3f7   :  { %2003 = vmatmul.msk.f32.vlgmr.msrb.gmra.mxu1 %vm61_vm1, %v521_v33 }
 0x3f8   :  { %2010 = vmatpush.msk.msra.mxu1 %vm64_vm0, %v511_v28 }
 0x3fb   :  { %v663_v36 = vpop.permute.xlu2 %662 }
 0x3fc   :  { %v664_v44 = vmul.f32 %v663_v36, %v2294_v34  ;;  %v2146_v36 = vmov 2  }
 0x3fd   :  { %2095 = vset.pattern.permute.xlu1 %v2146_v36 }
 0x3fe   :  { %905 = vperm.xlu1 %2095, %v2319_v17  }
 0x403   :  { %v635_v38 = vpop.permute.xlu2 %634 }
 0x404   :  { %2011 = vmatmul.msk.f32.vlgmr.msra.gmra.mxu1 %vm61_vm1, %v635_v38 }
 0x40b   :  { %v573_v39 = vpop.permute.xlu1 %572  ;;  %v728_v52 = vpop.permute.xlu2 %727 }
 0x40c   :  { %v574_v40 = vmul.f32 %v573_v39, %v2265_v16  ;;  %v514_v42 = vpop.permute.xlu0 %513 }
 0x40d   :  { %v515_v43 = vmul.f32 %v514_v42, %v2256_v9 }
 0x40e   :  { %2006 = vmatpush.msk.msrb.mxu3 %vm64_vm0, %v574_v40 }
 0x40f   :  { %2004 = vmatpush.msk.msrb.mxu2 %vm64_vm0, %v515_v43  ;;  %2007 = vmatmul.msk.f32.vlgmr.msrb.gmra.mxu3 %vm61_vm1, %v576_v35 }
 0x410   :  { %2005 = vmatmul.msk.f32.vlgmr.msrb.gmra.mxu2 %vm61_vm1, %v2327_v47 }
 0x411   :  { %2012 = vmatpush.msk.msra.mxu2 %vm64_vm0, %v664_v44 }
 0x413   :  { %801 = vmatpush.xpose.msrb.mxu2 %v2305_v41  ;;  %v694_v45 = vpop.permute.xlu1 %693 }
 0x414   :  { %v695_v46 = vmul.f32 %v694_v45, %v2285_v30  ;;  %v604_v48 = vpop.permute.xlu0 %603 }
 0x415   :  { %v605_v49 = vmul.f32 %v604_v48, %v2263_v15 }
 0x416   :  { %2014 = vmatpush.msk.msra.mxu3 %vm64_vm0, %v695_v46 }
 0x417   :  { %2008 = vmatpush.msk.msra.mxu0 %vm64_vm0, %v605_v49 }
 0x418   :  { %2020 = vmatpush.msk.msrb.mxu3 %vm366_vm2, %v2305_v41  ;;  %2009 = vmatmul.msk.f32.vlgmr.msra.gmra.mxu0 %vm61_vm1, %v607_v37  ;;  %v2147_v37 = vmov 3  }
 0x419   :  { %2013 = vmatmul.msk.f32.vlgmr.msra.gmra.mxu2 %vm61_vm1, %v666_v29  ;;  %2096 = vset.pattern.permute.xlu2 %v2147_v37 }
 0x41a   :  { %910 = vperm.xlu2 %2096, %v2319_v17  }
 0x41b   :  { %v697_v47 = vpop.permute.xlu1 %696 }
 0x41c   :  { %v725_v50 = vpop.permute.xlu0 %724  ;;  %2015 = vmatmul.msk.f32.vlgmr.msra.gmra.mxu3 %vm61_vm1, %v697_v47 }
 0x41d   :  { %v726_v51 = vmul.f32 %v725_v50, %v2261_v14 }
 0x41f   :  { %2016 = vmatpush.msk.msrb.mxu0 %vm64_vm0, %v726_v51 }
 0x420   :  { %2017 = vmatmul.msk.f32.vlgmr.msrb.gmra.mxu0 %vm61_vm1, %v728_v52 }
 0x421   :  { %855 = vmatpush.xpose.msra.mxu0 %v2305_v41 }
 0x423   :  { %v756_v53 = vpop.permute.xlu1 %755 }
 0x424   :  { %v757_v54 = vmul.f32 %v2278_v24, %v756_v53  ;;  %v759_v55 = vpop.permute.xlu0 %758 }
 0x426   :  { %2018 = vmatpush.msk.msrb.mxu1 %vm64_vm0, %v757_v54 }
 0x427   :  { %2019 = vmatmul.msk.f32.vlgmr.msrb.gmra.mxu1 %vm61_vm1, %v759_v55 }
 0x428   :  { %2022 = vmatpush.msk.msra.mxu1 %vm366_vm2, %v2305_v41 }
 0x470   :  { %v906_v54 = vpop.permute.xlu1 %905 }
 0x474   :  { %v544_v56 = vpop.f32.mrf.mxu1 }
 0x481   :  { %v658_v62 = vpop.f32.mrf.mxu1 }
 0x492   :  { %v599_v59 = vpop.f32.mrf.mxu3 }
 0x493   :  { %v569_v57 = vpop.f32.mrf.mxu2 }
 0x494   :  { %v570_v58 = vadd.f32 %v569_v57, %v544_v56  ;;  %v911_v56 = vpop.permute.xlu2 %910 }
 0x495   :  { %v630_v61 = vpop.f32.mrf.mxu0 }
 0x496   :  { %v602_v60 = vadd.f32 %v599_v59, %v570_v58  ;;  %v2395_v59 = vld [vmem:[%s2568_s5] sm:$0xff] }
 0x497   :  { %967 = vrot.lane.b32.xlu2 %v2395_v59, %s2134_s27  ;;  %1022 = vrot.lane.b32.xlu1 %v2395_v59, %s2132_s0 }
 0x498   :  { %v633_v63 = vadd.f32 %v630_v61, %v602_v60  ;;  %1053 = vrot.lane.b32.xlu0 %v2395_v59, %s2136_s29  ;;  %s2150_s29 = smov 72  }
 0x49a   :  { %v661_v0 = vadd.f32 %v658_v62, %v633_v63 }
 0x49c   :  { %v689_v1 = vpop.f32.mrf.mxu2 }
 0x49d   :  { %v692_v2 = vadd.f32 %v689_v1, %v661_v0  ;;  %v751_v4 = vpop.f32.mrf.mxu0 }
 0x49f   :  { %v720_v3 = vpop.f32.mrf.mxu3  ;;  %1081 = vrot.lane.b32.xlu2 %v2395_v59, %s2139_s11 }
 0x4a0   :  { %v723_v5 = vadd.f32 %v720_v3, %v692_v2 }
 0x4a2   :  { %v754_v7 = vadd.f32 %v751_v4, %v723_v5 }
 0x4a4   :  { %v782_v8 = vpop.f32.mrf.mxu1 }
 0x4a5   :  { %v785_v10 = vadd.f32 %v782_v8, %v754_v7 }
 0x4a7   :  { %802 = vmatmul.f32.vlgmr.msrb.gmra.mxu2 %v785_v10  ;;  %1112 = vrot.lane.b32.xlu2 %v2395_v59, %s2140_s12 }
 0x52a   :  { %v803_v11 = vpop.f32.mrf.mxu2 }
 0x52b   :  { %v806_v12 = vsel %vm353_vm3, %v803_v11, 0.0 }
 0x52c   :  { %v807_v13 = vrot.slane %v806_v12, 4 }
 0x52e   :  { %v808_v18 = vadd.f32 %v807_v13, %v806_v12 }
 0x530   :  { %v809_v19 = vrot.slane %v808_v18, 2 }
 0x532   :  { %v810_v20 = vadd.f32 %v809_v19, %v808_v18 }
 0x534   :  { %v811_v21 = vrot.slane %v810_v20, 1 }
 0x536   :  { %v812_v22 = vadd.f32 %v811_v21, %v810_v20 }
 0x538   :  { %v813_v25 = vmul.f32 0.00390625, %v812_v22 }
 0x53a   :  { %2021 = vmatmul.msk.f32.vlgmr.msrb.gmra.mxu3 %vm362_vm4, %v813_v25 }
 0x5bd   :  { %v834_v26 = vpop.f32.mrf.mxu3 }
 0x5be   :  { %v837_v27 = vperm.slane %v834_v26, 0 }
 0x5c0   :  { %v838_v28 = vsub.f32 %v785_v10, %v837_v27 }
 0x5c2   :  { %v839_v29 = vmul.f32 %v838_v28, %v838_v28 }
 0x5c4   :  { %856 = vmatmul.f32.vlgmr.msra.gmra.mxu0 %v839_v29 }
 0x641   :  { %v857_v31 = vpop.f32.mrf.mxu0 }
 0x642   :  { %v860_v32 = vsel %vm353_vm3, %v857_v31, 0.0 }
 0x643   :  { %v861_v33 = vrot.slane %v860_v32, 4 }
 0x645   :  { %v862_v35 = vadd.f32 %v861_v33, %v860_v32 }
 0x647   :  { %v863_v38 = vrot.slane %v862_v35, 2 }
 0x649   :  { %v864_v39 = vadd.f32 %v863_v38, %v862_v35 }
 0x64b   :  { %v865_v40 = vrot.slane %v864_v39, 1 }
 0x64d   :  { %v866_v42 = vadd.f32 %v865_v40, %v864_v39 }
 0x64f   :  { %v867_v43 = vmul.f32 0.00390625, %v866_v42 }
 0x651   :  { %v868_v44 = vadd.f32 1e-05, %v867_v43 }
 0x653   :  { %2108 = vrsqrt.f32 %v868_v44  ;;  %vm875_vm13 = vweird.f32 %v868_v44 }
 0x659   :  { %v2109_v45 = vpop.eup %2108 }
 0x65a   :  { %v870_v46 = vmul.f32 %v2109_v45, %v868_v44  ;;  %vm876_vm12 = vweird.f32 %v2109_v45 }
 0x65b   :  { %vm877_vm14 = vmor %vm875_vm13, %vm876_vm12  ;;  %vm1415_vm12 = vcmask 64512  }
 0x65c   :  { %v871_v48 = vmul.f32 %v2109_v45, %v870_v46  ;;  %v968_v46 = vpop.permute.xlu2 %967 }
 0x65e   :  { %v872_v49 = vmul.f32 0.5, %v871_v48 }
 0x660   :  { %v873_v47 = vsub.f32 1.5, %v872_v49  ;;  %v1023_v49 = vpop.permute.xlu1 %1022 }
 0x662   :  { %v874_v50 = vmul.f32 %v2109_v45, %v873_v47  ;;  %v1054_v47 = vpop.permute.xlu0 %1053 }
 0x664   :  { %v878_v51 = vsel %vm877_vm14, %v2109_v45, %v874_v50  ;;  %v1082_v48 = vpop.permute.xlu2 %1081 }
 0x665   :  { %2023 = vmatmul.msk.f32.vlgmr.msra.gmra.mxu1 %vm362_vm4, %v878_v51 }
 0x66c   :  { %v1113_v50 = vpop.permute.xlu2 %1112 }
 0x6e2   :  { %v899_v52 = vpop.f32.mrf.mxu1 }
 0x6e3   :  { %v902_v53 = vperm.slane %v899_v52, 0 }
 0x6e5   :  { %v903_v55 = vmul.f32 %v902_v53, %v838_v28 }
 0x6e7   :  { %v908_v57 = vmul.f32 %v906_v54, %v903_v55 }
 0x6e9   :  { %v913_v58 = vadd.f32 %v911_v56, %v908_v57 }
 0x6eb   :  { %v914_v60 = vadd.f32 %v913_v58, %v2224_v6 }
 0x6ed   :  { %v916_v61 = vmul.f32 0.70710677, %v914_v60  ;;  %v915_v43 = vmul.f32 0.5, %v914_v60 }
 0x6ef   :  { %v917_v62 = vmul.f32 %v916_v61, %v916_v61 }
 0x6f1   :  { %v918_v63 = vmin.f32 %v917_v62, 16.0 }
 0x6f3   :  { %v919_v0 = vmul.f32 2.1237322e-06, %v918_v63  ;;  %v930_v1 = vmul.f32 3.8918573e-05, %v918_v63 }
 0x6f5   :  { %v920_v2 = vadd.f32 0.00028619796, %v919_v0  ;;  %v931_v3 = vadd.f32 0.001143296, %v930_v1 }
 0x6f7   :  { %v921_v4 = vmul.f32 %v920_v2, %v918_v63  ;;  %v932_v5 = vmul.f32 %v931_v3, %v918_v63 }
 0x6f9   :  { %v933_v7 = vadd.f32 0.014752088, %v932_v5  ;;  %v922_v8 = vadd.f32 0.0036580483, %v921_v4 }
 0x6fb   :  { %v934_v6 = vmul.f32 %v933_v7, %v918_v63  ;;  %v923_v11 = vmul.f32 %v922_v8, %v918_v63 }
 0x6fd   :  { %v935_v10 = vadd.f32 0.112945676, %v934_v6  ;;  %v924_v18 = vadd.f32 0.05243302, %v923_v11 }
 0x6ff   :  { %v936_v12 = vmul.f32 %v935_v10, %v918_v63  ;;  %v925_v21 = vmul.f32 %v924_v18, %v918_v63 }
 0x701   :  { %v937_v13 = vadd.f32 0.4994258, %v936_v12  ;;  %v926_v22 = vadd.f32 0.18741608, %v925_v21 }
 0x703   :  { %v938_v19 = vmul.f32 %v937_v13, %v918_v63  ;;  %v927_v26 = vmul.f32 %v926_v22, %v918_v63 }
 0x705   :  { %v939_v20 = vadd.f32 1.0, %v938_v19  ;;  %v928_v31 = vadd.f32 1.1283791, %v927_v26 }
 0x707   :  { %2110 = vrcp.f32 %v939_v20  ;;  %v951_v29 = vand.u32 2147483648, %v939_v20  ;;  %v949_v33 = vand.u32 2147483647, %v939_v20  ;;  %vm945_vm3 = vweird.f32 %v939_v20 }
 0x708   :  { %v929_v37 = vmul.f32 %v928_v31, %v916_v61 }
 0x709   :  { %v952_v36 = vor.u32 1.1754944e-38, %v951_v29  ;;  %vm950_vm6 = vcmp.eq.f32.partialorder %v949_v33, 8.507059e+37 }
 0x70d   :  { %v2111_v25 = vpop.eup %2110 }
 0x70e   :  { %v941_v27 = vmul.f32 %v2111_v25, %v939_v20  ;;  %vm946_vm15 = vweird.f32 %v2111_v25 }
 0x70f   :  { %vm947_vm5 = vmor %vm945_vm3, %vm946_vm15 }
 0x710   :  { %v942_v28 = vsub.f32 1.0, %v941_v27 }
 0x712   :  { %v943_v32 = vmul.f32 %v2111_v25, %v942_v28 }
 0x714   :  { %v944_v35 = vadd.f32 %v2111_v25, %v943_v32 }
 0x716   :  { %v948_v38 = vsel %vm947_vm5, %v2111_v25, %v944_v35 }
 0x717   :  { %v953_v39 = vsel %vm950_vm6, %v952_v36, %v948_v38 }
 0x718   :  { %v954_v40 = vmul.f32 %v953_v39, %v929_v37 }
 0x71a   :  { %v2024_v42 = vclamps-f32 %v954_v40, 1.0 }
 0x71c   :  { %v957_v44 = vadd.f32 1.0, %v2024_v42 }
 0x71e   :  { %v958_v45 = vmul.f32 %v957_v44, %v915_v43 }
 0x720   :  { %1140 = vrot.lane.b32.xlu2 %v958_v45, %s2135_s28  ;;  %960 = vrot.lane.b32.xlu1 %v958_v45, %s2131_s23 }
 0x721   :  { %963 = vrot.lane.b32.xlu0 %v958_v45, %s2133_s26 }
 0x728   :  { %1109 = vrot.lane.b32.xlu1 %v958_v45, %s2137_s3  ;;  %1143 = vrot.lane.b32.xlu2 %v2395_v59, %s2138_s30 }
 0x729   :  { %1019 = vrot.lane.b32.xlu0 %v958_v45, %s2130_s22 }
 0x730   :  { %1202 = vrot.lane.b32.xlu1 %v958_v45, %s2142_s14 }
 0x731   :  { %1050 = vrot.lane.b32.xlu0 %v958_v45, %s2129_s21 }
 0x738   :  { %1171 = vrot.lane.b32.xlu1 %v958_v45, %s2132_s0 }
 0x739   :  { %1205 = vrot.lane.b32.xlu0 %v2395_v59, %s2143_s15 }
 0x741   :  { %1174 = vrot.lane.b32.xlu0 %v2395_v59, %s2141_s13 }
 0x77a   :  { %v1141_v56 = vpop.permute.xlu2 %1140 }
 0x77b   :  { %v1142_v61 = vmul.f32 %v1141_v56, %v2285_v30 }
 0x782   :  { %v1144_v1 = vpop.permute.xlu2 %1143 }
 0x792   :  { %v961_v51 = vpop.permute.xlu1 %960 }
 0x793   :  { %v962_v52 = vmul.f32 %v961_v51, %v2256_v9  ;;  %v964_v53 = vpop.permute.xlu0 %963 }
 0x794   :  { %v965_v54 = vmul.f32 %v964_v53, %v2273_v23 }
 0x795   :  { %2027 = vmatpush.msk.msra.mxu3 %vm64_vm0, %v962_v52 }
 0x796   :  { %2025 = vmatpush.msk.msra.mxu2 %vm64_vm0, %v965_v54  ;;  %2028 = vmatmul.msk.f32.vlgmr.msra.gmra.mxu3 %vm61_vm1, %v2395_v59 }
 0x797   :  { %2026 = vmatmul.msk.f32.vlgmr.msra.gmra.mxu2 %vm61_vm1, %v968_v46 }
 0x798   :  { %2033 = vmatpush.msk.msrb.mxu2 %vm64_vm0, %v958_v45 }
 0x79a   :  { %v1110_v55 = vpop.permute.xlu1 %1109 }
 0x79b   :  { %v1111_v57 = vmul.f32 %v1110_v55, %v2294_v34  ;;  %v1020_v58 = vpop.permute.xlu0 %1019 }
 0x79c   :  { %v1021_v60 = vmul.f32 %v1020_v58, %v2265_v16 }
 0x79d   :  { %2035 = vmatpush.msk.msrb.mxu3 %vm64_vm0, %v1111_v57 }
 0x79e   :  { %2029 = vmatpush.msk.msrb.mxu0 %vm64_vm0, %v1021_v60  ;;  %2036 = vmatmul.msk.f32.vlgmr.msrb.gmra.mxu3 %vm61_vm1, %v1113_v50 }
 0x79f   :  { %2030 = vmatmul.msk.f32.vlgmr.msrb.gmra.mxu0 %vm61_vm1, %v1023_v49  ;;  %2034 = vmatmul.msk.f32.vlgmr.msrb.gmra.mxu2 %vm61_vm1, %v1082_v48  ;;  %v2148_v49 = vmov 4  }
 0x7a0   :  { %2037 = vmatpush.msk.msra.mxu0 %vm64_vm0, %v1142_v61  ;;  %1248 = vmatpush.xpose.msra.mxu3 %v2305_v41 }
 0x7a1   :  { %2097 = vset.pattern.permute.xlu1 %v2148_v49 }
 0x7a2   :  { %2043 = vmatpush.msk.msrb.mxu0 %vm366_vm2, %v2305_v41  ;;  %v1203_v59 = vpop.permute.xlu1 %1202  ;;  %1352 = vperm.xlu1 %2097, %v2319_v17  }
 0x7a3   :  { %v1204_v62 = vmul.f32 %v2278_v24, %v1203_v59  ;;  %v1051_v63 = vpop.permute.xlu0 %1050 }
 0x7a4   :  { %v1052_v0 = vmul.f32 %v1051_v63, %v2263_v15 }
 0x7a5   :  { %2041 = vmatpush.msk.msra.mxu2 %vm64_vm0, %v1204_v62 }
 0x7a6   :  { %2031 = vmatpush.msk.msrb.mxu1 %vm64_vm0, %v1052_v0 }
 0x7a7   :  { %2045 = vmatpush.msk.msrb.mxu2 %vm366_vm2, %v2305_v41  ;;  %2032 = vmatmul.msk.f32.vlgmr.msrb.gmra.mxu1 %vm61_vm1, %v1054_v47  ;;  %v2149_v47 = vmov 5  }
 0x7a8   :  { %2038 = vmatmul.msk.f32.vlgmr.msra.gmra.mxu0 %vm61_vm1, %v1144_v1  ;;  %2098 = vset.pattern.permute.xlu2 %v2149_v47 }
 0x7a9   :  { %1357 = vperm.xlu2 %2098, %v2319_v17  }
 0x7aa   :  { %v1172_v2 = vpop.permute.xlu1 %1171 }
 0x7ab   :  { %v1173_v3 = vmul.f32 %v1172_v2, %v2261_v14  ;;  %v1206_v4 = vpop.permute.xlu0 %1205 }
 0x7ac   :  { %2042 = vmatmul.msk.f32.vlgmr.msra.gmra.mxu2 %vm61_vm1, %v1206_v4 }
 0x7ad   :  { %2039 = vmatpush.msk.msra.mxu1 %vm64_vm0, %v1173_v3  ;;  %v2464_v3 = vld [vmem:[%s2569_s6] sm:$0xff]  ;;  %s2151_s6 = smov 88  }
 0x7ae   :  { %1413 = vrot.lane.b32.xlu1 %v2464_v3, %s2132_s0  ;;  %1516 = vrot.lane.b32.xlu0 %v2464_v3, %s2143_s15 }
 0x7af   :  { %1302 = vmatpush.xpose.msrb.mxu1 %v2305_v41 }
 0x7b1   :  { %1600 = vrot.lane.b32.xlu2 %v2464_v3, %s2150_s29 }
 0x7b3   :  { %v1175_v24 = vpop.permute.xlu0 %1174 }
 0x7b4   :  { %2040 = vmatmul.msk.f32.vlgmr.msra.gmra.mxu1 %vm61_vm1, %v1175_v24 }
 0x7b6   :  { %1491 = vrot.lane.b32.xlu1 %v2464_v3, %s2138_s30  ;;  %s2152_s30 = smov 64  }
 0x7be   :  { %1463 = vrot.lane.b32.xlu1 %v2464_v3, %s2139_s11  ;;  %s2153_s11 = smov 80  }
 0x803   :  { %v1358_v2 = vpop.permute.xlu2 %1357 }
 0x814   :  { %v1353_v0 = vpop.permute.xlu1 %1352 }
 0x819   :  { %v1016_v7 = vpop.f32.mrf.mxu3 }
 0x81a   :  { %v991_v5 = vpop.f32.mrf.mxu2 }
 0x81b   :  { %v1017_v8 = vadd.f32 %v1016_v7, %v991_v5 }
 0x81c   :  { %v1046_v6 = vpop.f32.mrf.mxu0 }
 0x81d   :  { %v1049_v10 = vadd.f32 %v1046_v6, %v1017_v8 }
 0x821   :  { %v1136_v19 = vpop.f32.mrf.mxu3 }
 0x822   :  { %v1105_v13 = vpop.f32.mrf.mxu2 }
 0x824   :  { %v1077_v11 = vpop.f32.mrf.mxu1 }
 0x825   :  { %v1080_v12 = vadd.f32 %v1077_v11, %v1049_v10  ;;  %v1167_v21 = vpop.f32.mrf.mxu0 }
 0x827   :  { %v1108_v18 = vadd.f32 %v1105_v13, %v1080_v12 }
 0x829   :  { %v1139_v20 = vadd.f32 %v1136_v19, %v1108_v18 }
 0x82b   :  { %v1170_v22 = vadd.f32 %v1167_v21, %v1139_v20 }
 0x82f   :  { %v1229_v27 = vpop.f32.mrf.mxu2 }
 0x831   :  { %v1198_v25 = vpop.f32.mrf.mxu1 }
 0x832   :  { %v1201_v26 = vadd.f32 %v1198_v25, %v1170_v22 }
 0x834   :  { %v1232_v41 = vadd.f32 %v1229_v27, %v1201_v26 }
 0x836   :  { %1249 = vmatmul.f32.vlgmr.msra.gmra.mxu3 %v1232_v41 }
 0x8b9   :  { %v1250_v28 = vpop.f32.mrf.mxu3 }
 0x8ba   :  { %v1253_v29 = vsel %vm362_vm4, %v1250_v28, 0.0 }
 0x8bb   :  { %v1254_v31 = vrot.slane %v1253_v29, 4 }
 0x8bd   :  { %v1255_v32 = vadd.f32 %v1254_v31, %v1253_v29 }
 0x8bf   :  { %v1256_v33 = vrot.slane %v1255_v32, 2 }
 0x8c1   :  { %v1257_v35 = vadd.f32 %v1256_v33, %v1255_v32 }
 0x8c3   :  { %v1258_v36 = vrot.slane %v1257_v35, 1 }
 0x8c5   :  { %v1259_v37 = vadd.f32 %v1258_v36, %v1257_v35 }
 0x8c7   :  { %v1260_v38 = vmul.f32 0.001953125, %v1259_v37 }
 0x8c9   :  { %2044 = vmatmul.msk.f32.vlgmr.msrb.gmra.mxu0 %vm362_vm4, %v1260_v38 }
 0x946   :  { %v1281_v39 = vpop.f32.mrf.mxu0 }
 0x947   :  { %v1284_v40 = vperm.slane %v1281_v39, 0 }
 0x949   :  { %v1285_v42 = vsub.f32 %v1232_v41, %v1284_v40 }
 0x94b   :  { %v1286_v43 = vmul.f32 %v1285_v42, %v1285_v42 }
 0x94d   :  { %1303 = vmatmul.f32.vlgmr.msrb.gmra.mxu1 %v1286_v43 }
 0x9ca   :  { %v1304_v44 = vpop.f32.mrf.mxu1 }
 0x9cb   :  { %v1307_v45 = vsel %vm362_vm4, %v1304_v44, 0.0 }
 0x9cc   :  { %v1308_v46 = vrot.slane %v1307_v45, 4 }
 0x9ce   :  { %v1309_v48 = vadd.f32 %v1308_v46, %v1307_v45 }
 0x9d0   :  { %v1310_v50 = vrot.slane %v1309_v48, 2 }
 0x9d2   :  { %v1311_v51 = vadd.f32 %v1310_v50, %v1309_v48 }
 0x9d4   :  { %v1312_v52 = vrot.slane %v1311_v51, 1 }
 0x9d6   :  { %v1313_v53 = vadd.f32 %v1312_v52, %v1311_v51 }
 0x9d8   :  { %v1314_v54 = vmul.f32 0.001953125, %v1313_v53  ;;  %v1601_v53 = vpop.permute.xlu2 %1600 }
 0x9da   :  { %v1315_v55 = vadd.f32 1e-05, %v1314_v54  ;;  %v1414_v54 = vpop.permute.xlu1 %1413 }
 0x9dc   :  { %2112 = vrsqrt.f32 %v1315_v55  ;;  %vm1322_vm1 = vweird.f32 %v1315_v55 }
 0x9e2   :  { %v2113_v56 = vpop.eup %2112 }
 0x9e3   :  { %v1317_v57 = vmul.f32 %v2113_v56, %v1315_v55  ;;  %vm1323_vm0 = vweird.f32 %v2113_v56 }
 0x9e4   :  { %vm1324_vm7 = vmor %vm1322_vm1, %vm1323_vm0 }
 0x9e5   :  { %v1318_v58 = vmul.f32 %v2113_v56, %v1317_v57  ;;  %v1492_v57 = vpop.permute.xlu1 %1491 }
 0x9e7   :  { %v1319_v60 = vmul.f32 0.5, %v1318_v58 }
 0x9e9   :  { %v1320_v61 = vsub.f32 1.5, %v1319_v60 }
 0x9eb   :  { %v1321_v59 = vmul.f32 %v2113_v56, %v1320_v61 }
 0x9ed   :  { %v1325_v62 = vsel %vm1324_vm7, %v2113_v56, %v1321_v59  ;;  %v1464_v61 = vpop.permute.xlu1 %1463  ;;  %v1517_v59 = vpop.permute.xlu0 %1516 }
 0x9ee   :  { %2046 = vmatmul.msk.f32.vlgmr.msrb.gmra.mxu2 %vm362_vm4, %v1325_v62 }
 0xa71   :  { %v1346_v63 = vpop.f32.mrf.mxu2 }
 0xa72   :  { %v1349_v17 = vperm.slane %v1346_v63, 0 }
 0xa74   :  { %v1350_v1 = vmul.f32 %v1349_v17, %v1285_v42 }
 0xa76   :  { %v1355_v4 = vmul.f32 %v1353_v0, %v1350_v1  ;;  %v2127_v1 = vld [vmem:[%s2563_s1 + $0x8] ss:$0 sm:$0xff] }
 0xa78   :  { %v1360_v24 = vadd.f32 %v1358_v2, %v1355_v4 }
 0xa7a   :  { %v1362_v5 = vmul.f32 0.70710677, %v1360_v24  ;;  %v1361_v50 = vmul.f32 0.5, %v1360_v24 }
 0xa7c   :  { %v1363_v7 = vmul.f32 %v1362_v5, %v1362_v5 }
 0xa7e   :  { %v1364_v8 = vmin.f32 %v1363_v7, 16.0 }
 0xa80   :  { %v1365_v6 = vmul.f32 2.1237322e-06, %v1364_v8  ;;  %v1376_v10 = vmul.f32 3.8918573e-05, %v1364_v8 }
 0xa82   :  { %v1366_v11 = vadd.f32 0.00028619796, %v1365_v6  ;;  %v1377_v12 = vadd.f32 0.001143296, %v1376_v10 }
 0xa84   :  { %v1367_v13 = vmul.f32 %v1366_v11, %v1364_v8  ;;  %v1378_v18 = vmul.f32 %v1377_v12, %v1364_v8 }
 0xa86   :  { %v1379_v19 = vadd.f32 0.014752088, %v1378_v18  ;;  %v1368_v20 = vadd.f32 0.0036580483, %v1367_v13 }
 0xa88   :  { %v1380_v21 = vmul.f32 %v1379_v19, %v1364_v8  ;;  %v1369_v25 = vmul.f32 %v1368_v20, %v1364_v8 }
 0xa8a   :  { %v1381_v22 = vadd.f32 0.112945676, %v1380_v21  ;;  %v1370_v41 = vadd.f32 0.05243302, %v1369_v25 }
 0xa8c   :  { %v1382_v26 = vmul.f32 %v1381_v22, %v1364_v8  ;;  %v1371_v31 = vmul.f32 %v1370_v41, %v1364_v8 }
 0xa8e   :  { %v1383_v27 = vadd.f32 0.4994258, %v1382_v26  ;;  %v1372_v32 = vadd.f32 0.18741608, %v1371_v31 }
 0xa90   :  { %v1384_v28 = vmul.f32 %v1383_v27, %v1364_v8  ;;  %v1373_v35 = vmul.f32 %v1372_v32, %v1364_v8 }
 0xa92   :  { %v1385_v29 = vadd.f32 1.0, %v1384_v28  ;;  %v1374_v39 = vadd.f32 1.1283791, %v1373_v35 }
 0xa94   :  { %2114 = vrcp.f32 %v1385_v29  ;;  %v1397_v38 = vand.u32 2147483648, %v1385_v29  ;;  %v1395_v42 = vand.u32 2147483647, %v1385_v29  ;;  %vm1391_vm9 = vweird.f32 %v1385_v29 }
 0xa95   :  { %v1375_v45 = vmul.f32 %v1374_v39, %v1362_v5 }
 0xa96   :  { %v1398_v44 = vor.u32 1.1754944e-38, %v1397_v38  ;;  %vm1396_vm11 = vcmp.eq.f32.partialorder %v1395_v42, 8.507059e+37 }
 0xa9a   :  { %v2115_v33 = vpop.eup %2114 }
 0xa9b   :  { %v1387_v36 = vmul.f32 %v2115_v33, %v1385_v29  ;;  %vm1392_vm8 = vweird.f32 %v2115_v33 }
 0xa9c   :  { %vm1393_vm10 = vmor %vm1391_vm9, %vm1392_vm8 }
 0xa9d   :  { %v1388_v37 = vsub.f32 1.0, %v1387_v36 }
 0xa9f   :  { %v1389_v40 = vmul.f32 %v2115_v33, %v1388_v37 }
 0xaa1   :  { %v1390_v43 = vadd.f32 %v2115_v33, %v1389_v40 }
 0xaa3   :  { %v1394_v46 = vsel %vm1393_vm10, %v2115_v33, %v1390_v43 }
 0xaa4   :  { %v1399_v48 = vsel %vm1396_vm11, %v1398_v44, %v1394_v46 }
 0xaa5   :  { %v1400_v49 = vmul.f32 %v1399_v48, %v1375_v45  ;;  %v1786_v45 = vld [vmem:[%s2570_s8] sm:$0xff] }
 0xaa6   :  { %v2061_v46 = vmul.f32 -1.442695, %v1786_v45 }
 0xaa7   :  { %v2047_v47 = vclamps-f32 %v1400_v49, 1.0 }
 0xaa8   :  { %2116 = vpow2.f32 %v2061_v46 }
 0xaa9   :  { %v1403_v51 = vadd.f32 1.0, %v2047_v47  ;;  %v1787_v47 = vld [vmem:[%s2570_s8 + $0x8] sm:$0x3] }
 0xaab   :  { %v1404_v52 = vmul.f32 %v1403_v51, %v1361_v50  ;;  %v2062_v50 = vmul.f32 -1.442695, %v1787_v47 }
 0xaad   :  { %1625 = vrot.lane.b32.xlu1 %v1404_v52, %s2142_s14  ;;  %1488 = vrot.lane.b32.xlu2 %v1404_v52, %s2129_s21 }
 0xaae   :  { %1409 = vrot.lane.b32.xlu0 %v1404_v52, %s2133_s26  ;;  %v2117_v48 = vpop.eup %2116 }
 0xaaf   :  { %v1794_v49 = vadd.f32 1.0, %v2117_v48 }
 0xab1   :  { %2118 = vrcp.f32 %v1794_v49  ;;  %vm1801_vm13 = vweird.f32 %v1794_v49 }
 0xab2   :  { %2120 = vpow2.f32 %v2062_v50 }
 0xab5   :  { %1460 = vrot.lane.b32.xlu2 %v1404_v52, %s2130_s22  ;;  %1544 = vrot.lane.b32.xlu1 %v2464_v3, %s2151_s6 }
 0xab6   :  { %1406 = vrot.lane.b32.xlu0 %v1404_v52, %s2131_s23 }
 0xab7   :  { %v2119_v51 = vpop.eup %2118 }
 0xab8   :  { %vm1802_vm14 = vweird.f32 %v2119_v51 }
 0xab9   :  { %vm1803_vm15 = vmor %vm1801_vm13, %vm1802_vm14 }
 0xabd   :  { %1597 = vrot.lane.b32.xlu2 %v1404_v52, %s2132_s0 }
 0xabe   :  { %1541 = vrot.lane.b32.xlu0 %v1404_v52, %s2137_s3 }
 0xac5   :  { %1628 = vrot.lane.b32.xlu2 %v2464_v3, %s2152_s30 }
 0xac6   :  { %1569 = vrot.lane.b32.xlu0 %v1404_v52, %s2135_s28 }
 0xace   :  { %1572 = vrot.lane.b32.xlu0 %v2464_v3, %s2153_s11 }
 0xb07   :  { %v1489_v55 = vpop.permute.xlu2 %1488 }
 0xb08   :  { %v1490_v56 = vmul.f32 %v1489_v55, %v2263_v15  ;;  %v2495_v15 = vld [vmem:[%s2565_s2] sm:$0x3] }
 0xb0a   :  { %1510 = vmatpush.msra.mxu2 %v1490_v56 }
 0xb0b   :  { %2051 = vmatmul.msk.f32.vlgmr.msra.gmra.mxu2 %vm1415_vm12, %v1492_v57  ;;  %v1807_v57 = vand.u32 2147483648, %v1794_v49 }
 0xb0f   :  { %v1461_v58 = vpop.permute.xlu2 %1460 }
 0xb10   :  { %v1462_v60 = vmul.f32 %v1461_v58, %v2265_v16 }
 0xb12   :  { %1482 = vmatpush.msra.mxu1 %v1462_v60  ;;  %v1805_v60 = vand.u32 2147483647, %v1794_v49 }
 0xb13   :  { %2050 = vmatmul.msk.f32.vlgmr.msra.gmra.mxu1 %vm1415_vm12, %v1464_v61  ;;  %v1808_v61 = vor.u32 1.1754944e-38, %v1807_v57 }
 0xb14   :  { %vm1806_vm3 = vcmp.eq.f32.partialorder %v1805_v60, 8.507059e+37 }
 0xb17   :  { %v1598_v62 = vpop.permute.xlu2 %1597 }
 0xb18   :  { %v1599_v63 = vmul.f32 %v1598_v62, %v2261_v14 }
 0xb1a   :  { %1619 = vmatpush.msrb.mxu2 %v1599_v63 }
 0xb1b   :  { %2055 = vmatmul.msk.f32.vlgmr.msrb.gmra.mxu2 %vm1415_vm12, %v1601_v53  ;;  %v1797_v53 = vmul.f32 %v2119_v51, %v1794_v49 }
 0xb1c   :  { %1722 = vmatpush.xpose.msra.mxu2 %v2495_v15 }
 0xb1d   :  { %v1798_v55 = vsub.f32 1.0, %v1797_v53 }
 0xb1f   :  { %v1626_v16 = vpop.permute.xlu1 %1625  ;;  %v1629_v7 = vpop.permute.xlu2 %1628  ;;  %v1799_v56 = vmul.f32 %v2119_v51, %v1798_v55 }
 0xb20   :  { %v1410_v17 = vpop.permute.xlu0 %1409  ;;  %v1627_v14 = vmul.f32 %v2127_v1, %v1626_v16 }
 0xb21   :  { %v1411_v0 = vmul.f32 %v1410_v17, %v2273_v23  ;;  %v1800_v58 = vadd.f32 %v2119_v51, %v1799_v56 }
 0xb23   :  { %1433 = vmatpush.msrb.mxu3 %v1411_v0 }
 0xb24   :  { %2048 = vmatmul.msk.f32.vlgmr.msrb.gmra.mxu3 %vm1415_vm12, %v1414_v54 }
 0xb25   :  { %1535 = vmatpush.msra.mxu3 %v1404_v52  ;;  %v2121_v52 = vpop.eup %2120 }
 0xb26   :  { %v1795_v54 = vadd.f32 1.0, %v2121_v52 }
 0xb27   :  { %1647 = vmatpush.msrb.mxu3 %v1627_v14  ;;  %v1545_v5 = vpop.permute.xlu1 %1544 }
 0xb28   :  { %v1407_v2 = vpop.permute.xlu0 %1406  ;;  %2122 = vrcp.f32 %v1795_v54  ;;  %vm1816_vm5 = vweird.f32 %v1795_v54 }
 0xb29   :  { %v1408_v4 = vmul.f32 %v1407_v2, %v2256_v9 }
 0xb2b   :  { %1455 = vmatpush.msra.mxu0 %v1408_v4 }
 0xb2c   :  { %2049 = vmatmul.msk.f32.vlgmr.msra.gmra.mxu0 %vm1415_vm12, %v2464_v3  ;;  %2052 = vmatmul.msk.f32.vlgmr.msra.gmra.mxu3 %vm1415_vm12, %v1517_v59  ;;  %v1804_v59 = vsel %vm1803_vm15, %v2119_v51, %v1800_v58 }
 0xb2d   :  { %2059 = vmatpush.msk.msra.mxu3 %vm366_vm2, %v2495_v15  ;;  %v1809_v63 = vsel %vm1806_vm3, %v1808_v61, %v1804_v59 }
 0xb2e   :  { %v2123_v62 = vpop.eup %2122  ;;  %v1826_v17 = vmul.f32 %v1809_v63, %v1786_v45 }
 0xb2f   :  { %v1812_v16 = vmul.f32 %v2123_v62, %v1795_v54  ;;  %vm1817_vm6 = vweird.f32 %v2123_v62 }
 0xb30   :  { %v1542_v23 = vpop.permute.xlu0 %1541  ;;  %1834 = vst [vmem:[#allocation1] ss:$4 sm:$0xff] %v1826_v17  ;;  %vm2530_vm0 = vmor %vm1816_vm5, %vm1817_vm6 }
 0xb31   :  { %v1543_v24 = vmul.f32 %v1542_v23, %v2294_v34  ;;  %v1813_v1 = vsub.f32 1.0, %v1812_v16  ;;  %v1822_v23 = vand.u32 2147483648, %v1795_v54 }
 0xb33   :  { %1563 = vmatpush.msrb.mxu0 %v1543_v24  ;;  %v1814_v4 = vmul.f32 %v2123_v62, %v1813_v1 }
 0xb34   :  { %2053 = vmatmul.msk.f32.vlgmr.msrb.gmra.mxu0 %vm1415_vm12, %v1545_v5  ;;  %2056 = vmatmul.msk.f32.vlgmr.msrb.gmra.mxu3 %vm1415_vm12, %v1629_v7 }
 0xb35   :  { %1668 = vmatpush.xpose.msra.mxu0 %v2495_v15  ;;  %v1815_v5 = vadd.f32 %v2123_v62, %v1814_v4 }
 0xb38   :  { %v1570_v9 = vpop.permute.xlu0 %1569 }
 0xb39   :  { %v1571_v3 = vmul.f32 %v1570_v9, %v2285_v30  ;;  %v1820_v9 = vand.u32 2147483647, %v1795_v54 }
 0xb3b   :  { %1591 = vmatpush.msrb.mxu1 %v1571_v3  ;;  %vm1821_vm1 = vcmp.eq.f32.partialorder %v1820_v9, 8.507059e+37 }
 0xb3d   :  { %2057 = vmatpush.msk.msra.mxu1 %vm366_vm2, %v2495_v15 }
 0xb40   :  { %v1573_v8 = vpop.permute.xlu0 %1572 }
 0xb41   :  { %2054 = vmatmul.msk.f32.vlgmr.msrb.gmra.mxu1 %vm1415_vm12, %v1573_v8  ;;  %v1783_v8 = vld [vmem:[%s2571_s9 + $0x10] sm:$0xff] }
 0xb8e   :  { %v1512_v13 = vpop.f32.mrf.mxu2 }
 0xb90   :  { %v1484_v11 = vpop.f32.mrf.mxu1 }
 0xb9e   :  { %v1621_v26 = vpop.f32.mrf.mxu2 }
 0xba7   :  { %v1435_v6 = vpop.f32.mrf.mxu3 }
 0xba9   :  { %v1457_v34 = vpop.f32.mrf.mxu0 }
 0xbaa   :  { %v1458_v10 = vadd.f32 %v1457_v34, %v1435_v6  ;;  %v1781_v34 = vld [vmem:[%s2571_s9] sm:$0xff]  ;;  %v1823_v6 = vor.u32 1.1754944e-38, %v1822_v23 }
 0xbac   :  { %v1487_v12 = vadd.f32 %v1484_v11, %v1458_v10  ;;  %v1839_v10 = vld.sshfl [vmem:[#allocation1 + $0x10] sm:$0xff pattern:$0x73625140]  ;;  %v1837_v11 = vld.sshfl [vmem:[#allocation1] sm:$0xff pattern:$0x73625140] }
 0xbad   :  { %1902 = vmatpush.xpose.msrb.mxu2 %v1839_v10  ;;  %1862 = vmatpush.xpose.msrb.mxu0 %v1837_v11 }
 0xbae   :  { %v1515_v18 = vadd.f32 %v1512_v13, %v1487_v12  ;;  %v1819_v12 = vsel %vm2530_vm0, %v2123_v62, %v1815_v5 }
 0xbaf   :  { %v1537_v19 = vpop.f32.mrf.mxu3 }
 0xbb0   :  { %v1540_v20 = vadd.f32 %v1537_v19, %v1515_v18  ;;  %v1840_v18 = vld.sshfl [vmem:[#allocation1 + $0x18] sm:$0xff pattern:$0x73625140]  ;;  %v1838_v19 = vld.sshfl [vmem:[#allocation1 + $0x8] sm:$0xff pattern:$0x73625140] }
 0xbb1   :  { %v1565_v21 = vpop.f32.mrf.mxu0  ;;  %1922 = vmatpush.xpose.msrb.mxu3 %v1840_v18  ;;  %1882 = vmatpush.xpose.msrb.mxu1 %v1838_v19 }
 0xbb2   :  { %v1568_v22 = vadd.f32 %v1565_v21, %v1540_v20  ;;  %v1824_v21 = vsel %vm1821_vm1, %v1823_v6, %v1819_v12 }
 0xbb7   :  { %v1649_v27 = vpop.f32.mrf.mxu3 }
 0xbbe   :  { %v1593_v25 = vpop.f32.mrf.mxu1 }
 0xbbf   :  { %v1596_v30 = vadd.f32 %v1593_v25, %v1568_v22  ;;  %v1827_v22 = vmul.f32 %v1824_v21, %v1787_v47 }
 0xbc1   :  { %v1624_v41 = vadd.f32 %v1621_v26, %v1596_v30  ;;  %v1782_v30 = vld [vmem:[%s2571_s9 + $0x8] sm:$0xff]  ;;  %1836 = vst [vmem:[#allocation1 + $0x20] ss:$4 sm:$0xff] %v1827_v22  ;;  %v2154_v26 = vmov 8  }
 0xbc2   :  { %2099 = vset.pattern.permute.xlu1 %v2154_v26 }
 0xbc3   :  { %v1652_v28 = vadd.f32 %v1649_v27, %v1624_v41  ;;  %v2128_v41 = vld [vmem:[%s2566_s7] sm:$0xff] }
 0xbc4   :  { %1829 = vperm.xlu1 %2099, %v2128_v41  }
 0xbc5   :  { %1669 = vmatmul.f32.vlgmr.msra.gmra.mxu0 %v1652_v28 }
 0xbcd   :  { %1863 = vmatmul.f32.vlgmr.msrb.gmra.mxu0 %v1781_v34 }
 0xc42   :  { %v1670_v29 = vpop.f32.mrf.mxu0 }
 0xc43   :  { %v1673_v31 = vsel %vm362_vm4, %v1670_v29, 0.0 }
 0xc44   :  { %v1674_v32 = vrot.slane %v1673_v31, 4 }
 0xc46   :  { %v1675_v33 = vadd.f32 %v1674_v32, %v1673_v31  ;;  %v1841_v31 = vld.sshfl [vmem:[#allocation1 + $0x20] sm:$0xff pattern:$0x73625140] }
 0xc47   :  { %1942 = vmatpush.xpose.msra.mxu0 %v1841_v31  ;;  %v1785_v32 = vld [vmem:[%s2571_s9 + $0x20] sm:$0xff] }
 0xc48   :  { %v1676_v35 = vrot.slane %v1675_v33, 2 }
 0xc4a   :  { %v1677_v36 = vadd.f32 %v1676_v35, %v1675_v33  ;;  %1943 = vmatmul.f32.vlgmr.msra.gmra.mxu0 %v1785_v32  ;;  %v1864_v45 = vpop.f32.mrf.mxu0 }
 0xc4c   :  { %v1678_v37 = vrot.slane %v1677_v36, 1 }
 0xc4e   :  { %v1679_v38 = vadd.f32 %v1678_v37, %v1677_v36 }
 0xc50   :  { %v1680_v39 = vmul.f32 0.001953125, %v1679_v38 }
 0xc52   :  { %2058 = vmatmul.msk.f32.vlgmr.msra.gmra.mxu1 %vm362_vm4, %v1680_v39 }
 0xc53   :  { %2063 = vmatpush.msk.msra.mxu1 %vm366_vm2, %v2495_v15  ;;  %v2156_v15 = vmov 6  }
 0xc54   :  { %2100 = vset.pattern.permute.xlu2 %v2156_v15 }
 0xc55   :  { %1772 = vperm.xlu2 %2100, %v2128_v41  }
 0xc5a   :  { %1883 = vmatmul.f32.vlgmr.msrb.gmra.mxu1 %v1782_v30 }
 0xcaf   :  { %v1773_v58 = vpop.permute.xlu2 %1772 }
 0xcc7   :  { %v1944_v53 = vpop.f32.mrf.mxu0 }
 0xccf   :  { %v1701_v40 = vpop.f32.mrf.mxu1 }
 0xcd0   :  { %v1704_v42 = vperm.slane %v1701_v40, 0 }
 0xcd2   :  { %v2519_v43 = vsub.f32 %v1652_v28, %v1704_v42  ;;  %v2155_v28 = vmov 7   ;;  %v1784_v42 = vld [vmem:[%s2571_s9 + $0x18] sm:$0xff] }
 0xcd3   :  { %2101 = vset.pattern.permute.xlu0 %v2155_v28 }
 0xcd4   :  { %v1706_v44 = vmul.f32 %v2519_v43, %v2519_v43  ;;  %1777 = vperm.xlu0 %2101, %v2128_v41  }
 0xcd6   :  { %1723 = vmatmul.f32.vlgmr.msra.gmra.mxu2 %v1706_v44  ;;  %v1830_v44 = vpop.permute.xlu1 %1829 }
 0xcd7   :  { %v1865_v46 = vadd.f32 %v1864_v45, %v1830_v44  ;;  %v1884_v48 = vpop.f32.mrf.mxu1 }
 0xcd9   :  { %v1885_v47 = vadd.f32 %v1884_v48, %v1865_v46 }
 0xcdc   :  { %2102 = vset.pattern.permute.xlu0 %v2154_v26 }
 0xcde   :  { %1903 = vmatmul.f32.vlgmr.msrb.gmra.mxu2 %v1783_v8 }
 0xd46   :  { %v1778_v61 = vpop.permute.xlu0 %1777 }
 0xd59   :  { %v1724_v0 = vpop.f32.mrf.mxu2 }
 0xd5a   :  { %v1727_v14 = vsel %vm362_vm4, %v1724_v0, 0.0 }
 0xd5b   :  { %v1728_v2 = vrot.slane %v1727_v14, 4 }
 0xd5d   :  { %v1729_v24 = vadd.f32 %v1728_v2, %v1727_v14 }
 0xd5f   :  { %v1730_v3 = vrot.slane %v1729_v24, 2 }
 0xd61   :  { %v1731_v13 = vadd.f32 %v1730_v3, %v1729_v24  ;;  %v1904_v50 = vpop.f32.mrf.mxu2 }
 0xd62   :  { %v1905_v51 = vadd.f32 %v1904_v50, %v1885_v47 }
 0xd63   :  { %v1732_v20 = vrot.slane %v1731_v13, 1 }
 0xd65   :  { %v1733_v25 = vadd.f32 %v1732_v20, %v1731_v13 }
 0xd67   :  { %v1734_v27 = vmul.f32 0.001953125, %v1733_v25 }
 0xd69   :  { %v1735_v29 = vadd.f32 1e-05, %v1734_v27 }
 0xd6b   :  { %2124 = vrsqrt.f32 %v1735_v29  ;;  %vm1742_vm7 = vweird.f32 %v1735_v29 }
 0xd71   :  { %v2125_v33 = vpop.eup %2124 }
 0xd72   :  { %v1737_v35 = vmul.f32 %v2125_v33, %v1735_v29  ;;  %vm1743_vm2 = vweird.f32 %v2125_v33 }
 0xd73   :  { %vm1744_vm8 = vmor %vm1742_vm7, %vm1743_vm2 }
 0xd74   :  { %v1738_v36 = vmul.f32 %v2125_v33, %v1737_v35 }
 0xd76   :  { %v1739_v37 = vmul.f32 0.5, %v1738_v36 }
 0xd78   :  { %v1740_v38 = vsub.f32 1.5, %v1739_v37 }
 0xd7a   :  { %v1741_v39 = vmul.f32 %v2125_v33, %v1740_v38 }
 0xd7c   :  { %v1745_v40 = vsel %vm1744_vm8, %v2125_v33, %v1741_v39 }
 0xd7d   :  { %2060 = vmatmul.msk.f32.vlgmr.msra.gmra.mxu3 %vm362_vm4, %v1745_v40 }
 0xd85   :  { %1923 = vmatmul.f32.vlgmr.msrb.gmra.mxu3 %v1784_v42 }
 0xe00   :  { %v1766_v49 = vpop.f32.mrf.mxu3 }
 0xe01   :  { %v1769_v56 = vperm.slane %v1766_v49, 0 }
 0xe03   :  { %v1770_v57 = vmul.f32 %v1769_v56, %v2519_v43 }
 0xe05   :  { %v1775_v60 = vmul.f32 %v1773_v58, %v1770_v57 }
 0xe07   :  { %v1780_v59 = vadd.f32 %v1778_v61, %v1775_v60 }
 0xe08   :  { %v1924_v52 = vpop.f32.mrf.mxu3 }
 0xe09   :  { %v1925_v54 = vadd.f32 %v1924_v52, %v1905_v51 }
 0xe0b   :  { %v1945_v55 = vadd.f32 %v1944_v53, %v1925_v54 }
 0xe0d   :  { %2064 = vmatmul.msk.f32.vlgmr.msra.gmra.mxu1 %vm362_vm4, %v1945_v55 }
 0xe8a   :  { %v1967_v62 = vpop.f32.mrf.mxu1 }
 0xe8b   :  { %v1970_v63 = vadd.f32 %v1967_v62, %v1780_v59 }
 0xe8d   :  { %1971 = vst [vmem:[%s2572_s10] sm:$0xff] %v1970_v63 }

</bundles_post_ra>
